<compile_context>
chip_gen: v7x
topology: tpu7x:2x2x1
jax: 0.10.0
libtpu: 0.0.40
codegen_flags: <defaults>
</compile_context>

<pallas_src>
import math
from functools import partial

import jax
import jax.numpy as jnp
from jax.experimental import pallas as pl
from jax.experimental.pallas import tpu as pltpu


def _round_up(x, m):
    return (x + m - 1) // m * m


# ---------------------------------------------------------------------------
# Pallas kernels
# ---------------------------------------------------------------------------
def _matmul_kernel(a_ref, b_ref, c_ref, o_ref, acc_ref, *, act):
    @pl.when(pl.program_id(2) == 0)
    def _():
        acc_ref[...] = jnp.zeros_like(acc_ref)

    acc_ref[...] += jnp.dot(a_ref[...], b_ref[...],
                            preferred_element_type=jnp.float32)

    @pl.when(pl.program_id(2) == pl.num_programs(2) - 1)
    def _():
        y = acc_ref[...] + c_ref[...]
        if act == "relu":
            y = jnp.maximum(y, 0.0)
        elif act == "sigmoid":
            y = 1.0 / (1.0 + jnp.exp(-y))
        o_ref[...] = y.astype(o_ref.dtype)


def matmul_bias_act(a, b, bias, *, act="none", out_dtype=jnp.bfloat16):
    """act((A @ B) + bias); bf16 MXU operands, f32 accumulation, fused epilogue."""
    M, K = a.shape
    K2, N = b.shape
    assert K == K2

    # Adaptive, 128-aligned tiles (up to 512 in M/N, up to 1024 along K).
    tm = min(512, _round_up(M, 128))
    tn = min(512, _round_up(N, 128))
    Kp = _round_up(K, 128)
    if Kp <= 1024:
        tk = Kp                      # single K pass, no accumulator revisits
    elif Kp % 512 == 0:
        tk = 512
    elif Kp % 384 == 0:
        tk = 384
    elif Kp % 256 == 0:
        tk = 256
    else:
        tk = 128
    Mp, Np = _round_up(M, tm), _round_up(N, tn)

    a_p = jnp.pad(a.astype(jnp.bfloat16), ((0, Mp - M), (0, Kp - K)))
    b_p = jnp.pad(b.astype(jnp.bfloat16), ((0, Kp - K), (0, Np - N)))
    c_p = jnp.pad(bias.astype(jnp.float32), (0, Np - N)).reshape(1, Np)

    out = pl.pallas_call(
        partial(_matmul_kernel, act=act),
        out_shape=jax.ShapeDtypeStruct((Mp, Np), out_dtype),
        grid_spec=pltpu.PrefetchScalarGridSpec(
            num_scalar_prefetch=0,
            grid=(Mp // tm, Np // tn, Kp // tk),
            in_specs=[
                pl.BlockSpec((tm, tk), lambda i, j, k: (i, k)),
                pl.BlockSpec((tk, tn), lambda i, j, k: (k, j)),
                pl.BlockSpec((1, tn), lambda i, j, k: (0, j)),
            ],
            out_specs=pl.BlockSpec((tm, tn), lambda i, j, k: (i, j)),
            scratch_shapes=[pltpu.VMEM((tm, tn), jnp.float32)],
        ),
        compiler_params=pltpu.CompilerParams(
            dimension_semantics=("parallel", "parallel", "arbitrary")),
    )(a_p, b_p, c_p)
    return out[:M, :N]


def _add_relu_kernel(x_ref, y_ref, o_ref):
    s = x_ref[...].astype(jnp.float32) + y_ref[...].astype(jnp.float32)
    o_ref[...] = jnp.maximum(s, 0.0).astype(o_ref.dtype)


def add_relu(x, y):
    """Fused residual add + ReLU on NHWC bf16 activations (C multiple of 128)."""
    N, H, W, C = x.shape
    rows = N * H * W
    tr = min(512, _round_up(rows, 128))
    rp = _round_up(rows, tr)
    xf = jnp.pad(x.reshape(rows, C), ((0, rp - rows), (0, 0)))
    yf = jnp.pad(y.reshape(rows, C), ((0, rp - rows), (0, 0)))
    out = pl.pallas_call(
        _add_relu_kernel,
        out_shape=jax.ShapeDtypeStruct((rp, C), x.dtype),
        grid=(rp // tr,),
        in_specs=[pl.BlockSpec((tr, C), lambda i: (i, 0)),
                  pl.BlockSpec((tr, C), lambda i: (i, 0))],
        out_specs=pl.BlockSpec((tr, C), lambda i: (i, 0)),
    )(xf, yf)
    return out[:rows].reshape(N, H, W, C)


def _max9_kernel(x_ref, o_ref):
    o_ref[...] = jnp.max(x_ref[...], axis=0)


def maxpool_3x3_s2_p1(x):
    """NHWC max pool, kernel 3, stride 2, padding 1 (ResNet stem maxpool)."""
    # TODO(synk): the 9-view stack still writes ~2.25x the input through HBM;
    # an in-kernel tap formulation would make this a single-pass op.
    N, H, W, C = x.shape
    Ho = (H + 2 - 3) // 2 + 1
    Wo = (W + 2 - 3) // 2 + 1
    neg = float(jnp.finfo(x.dtype).min)
    xp = jnp.pad(x, ((0, 0), (1, 1), (1, 1), (0, 0)), constant_values=neg)
    views = []
    for di in range(3):
        for dj in range(3):
            views.append(xp[:, di::2, dj::2, :][:, :Ho, :Wo, :].reshape(-1))
    stacked = jnp.stack(views, axis=0)                    # [9, N*Ho*Wo*C]
    flat = stacked.shape[1]
    tr, cols = 512, 128
    n = _round_up(flat, tr * cols)
    sp = jnp.pad(stacked, ((0, 0), (0, n - flat)),
                 constant_values=neg).reshape(9, -1, cols)
    rows = sp.shape[1]
    out = pl.pallas_call(
        _max9_kernel,
        out_shape=jax.ShapeDtypeStruct((rows, cols), x.dtype),
        grid=(rows // tr,),
        in_specs=[pl.BlockSpec((9, tr, cols), lambda i: (0, i, 0))],
        out_specs=pl.BlockSpec((tr, cols), lambda i: (i, 0)),
    )(sp)
    return out.reshape(-1)[:flat].reshape(N, Ho, Wo, C)


def _mean9_kernel(x_ref, o_ref):
    o_ref[...] = jnp.sum(x_ref[...].astype(jnp.float32), axis=0) * (1.0 / 9.0)


def avg_pool_3x3(x):
    """F.avg_pool2d(x, 3) for the 1x1-output case: one 3x3 window at (0,0)."""
    # TODO(synk): only correct when the pooled output is 1x1 (d_out == 1).
    P, H, W, C = x.shape
    xw = x[:, :3, :3, :].reshape(P, 9, C).transpose(1, 0, 2)   # [9, P, C]
    Pp = _round_up(P, 16)
    xp = jnp.pad(xw, ((0, 0), (0, Pp - P), (0, 0)))
    out = pl.pallas_call(
        _mean9_kernel,
        out_shape=jax.ShapeDtypeStruct((Pp, C), jnp.float32),
        grid=(1,),
        in_specs=[pl.BlockSpec((9, Pp, C), lambda i: (0, 0, 0))],
        out_specs=pl.BlockSpec((Pp, C), lambda i: (0, 0)),
    )(xp)
    return out[:P]


def _sqerr_sum_kernel(s_ref, l_ref, o_ref):
    d = l_ref[...] - s_ref[...]
    o_ref[0, 0] = jnp.sum(d * d)


def squared_error_sum(score, label):
    flat = score.size
    n = _round_up(max(flat, 1), 8 * 128)
    sp = jnp.pad(score.reshape(-1).astype(jnp.float32), (0, n - flat)).reshape(-1, 128)
    lp = jnp.pad(label.reshape(-1).astype(jnp.float32), (0, n - flat)).reshape(-1, 128)
    out = pl.pallas_call(
        _sqerr_sum_kernel,
        out_shape=jax.ShapeDtypeStruct((1, 1), jnp.float32),
        grid=(1,),
        in_specs=[pl.BlockSpec(sp.shape, lambda i: (0, 0)),
                  pl.BlockSpec(lp.shape, lambda i: (0, 0))],
        out_specs=pl.BlockSpec((1, 1), lambda i: (0, 0),
                               memory_space=pltpu.MemorySpace.SMEM),
    )(sp, lp)
    return out[0, 0]


# ---------------------------------------------------------------------------
# Model glue: conv = bf16 im2col (JAX) + Pallas matmul with fused bias/act
# ---------------------------------------------------------------------------
def conv2d_bias_act(x, wm, bias, *, kh, kw, cout, stride=1, padding=0,
                    act="none"):
    N, H, W, Cin = x.shape
    Ho = (H + 2 * padding - kh) // stride + 1
    Wo = (W + 2 * padding - kw) // stride + 1
    xp = x if padding == 0 else jnp.pad(
        x, ((0, 0), (padding, padding), (padding, padding), (0, 0)))
    if kh == 1 and kw == 1:
        pm = xp[:, ::stride, ::stride, :][:, :Ho, :Wo, :].reshape(N * Ho * Wo, Cin)
    else:
        cols = []
        for di in range(kh):
            for dj in range(kw):
                cols.append(xp[:, di::stride, dj::stride, :][:, :Ho, :Wo, :])
        pm = jnp.concatenate(cols, axis=-1).reshape(N * Ho * Wo, kh * kw * Cin)
    out = matmul_bias_act(pm, wm, bias, act=act, out_dtype=jnp.bfloat16)
    return out.reshape(N, Ho, Wo, cout)


def bottleneck_forward(x, p):
    pln = p["planes"]
    out = conv2d_bias_act(x, p["w1"], p["b1"], kh=1, kw=1, cout=pln,
                          stride=1, padding=0, act="relu")
    out = conv2d_bias_act(out, p["w2"], p["b2"], kh=3, kw=3, cout=pln,
                          stride=p["stride"], padding=1, act="relu")
    out = conv2d_bias_act(out, p["w3"], p["b3"], kh=1, kw=1, cout=pln * 4,
                          stride=1, padding=0, act="none")
    if p["wd"] is not None:
        residual = conv2d_bias_act(x, p["wd"], p["bd"], kh=1, kw=1, cout=pln * 4,
                                   stride=p["stride"], padding=0, act="none")
    else:
        residual = x
    return add_relu(out, residual)


def repnet_forward(x, rp):
    # stem: conv7x7 s2 -> BN -> Sigmoid (ResNet.relu is nn.Sigmoid()!) -> maxpool
    x = conv2d_bias_act(x, rp["conv1_w"], rp["conv1_b"], kh=7, kw=7, cout=64,
                        stride=2, padding=3, act="sigmoid")
    x = maxpool_3x3_s2_p1(x)
    for p in rp["layer1"]:
        x = bottleneck_forward(x, p)
    for p in rp["layer2"]:
        x = bottleneck_forward(x, p)
    for p in rp["layer3"]:
        x = bottleneck_forward(x, p)
    return x


# ---------------------------------------------------------------------------
# Parameter init (deterministic, synthetic); BN folded into weights/bias
# ---------------------------------------------------------------------------
def init_conv(key, kh, kw, cin, cout):
    std = math.sqrt(2.0 / (kh * kw * cout))
    return std * jax.random.normal(key, (kh, kw, cin, cout), jnp.float32)


def bn_fold(c, eps=1e-5):
    gamma = jnp.ones((c,), jnp.float32)
    beta = jnp.zeros((c,), jnp.float32)
    mean = jnp.zeros((c,), jnp.float32)
    var = jnp.ones((c,), jnp.float32)
    scale = gamma / jnp.sqrt(var + eps)
    bias = beta - mean * scale
    return scale, bias


def fold_conv_bn(w, scale):
    """Scale conv weight columns by the folded BN scale; flatten; cast bf16."""
    kh, kw, cin, cout = w.shape
    wm = (w * scale[None, None, None, :]).reshape(kh * kw * cin, cout)
    return wm.astype(jnp.bfloat16)


def make_bottleneck_params(key, inplanes, planes, stride, with_ds):
    k = jax.random.split(key, 4)
    p = {"stride": stride, "planes": planes}
    s1, b1 = bn_fold(planes)
    p["w1"] = fold_conv_bn(init_conv(k[0], 1, 1, inplanes, planes), s1)
    p["b1"] = b1
    s2, b2 = bn_fold(planes)
    p["w2"] = fold_conv_bn(init_conv(k[1], 3, 3, planes, planes), s2)
    p["b2"] = b2
    s3, b3 = bn_fold(planes * 4)
    p["w3"] = fold_conv_bn(init_conv(k[2], 1, 1, planes, planes * 4), s3)
    p["b3"] = b3
    if with_ds:
        sd, bd = bn_fold(planes * 4)
        p["wd"] = fold_conv_bn(init_conv(k[3], 1, 1, inplanes, planes * 4), sd)
        p["bd"] = bd
    else:
        p["wd"] = None
    return p


def make_layer(key, inplanes, planes, blocks, stride):
    keys = jax.random.split(key, blocks)
    with_ds = (stride != 1) or (inplanes != planes * 4)
    params = [make_bottleneck_params(keys[0], inplanes, planes, stride, with_ds)]
    inplanes = planes * 4
    for i in range(1, blocks):
        params.append(make_bottleneck_params(keys[i], inplanes, planes, 1, False))
    return params, inplanes


def init_compare_params(key):
    keys = jax.random.split(key, 8)
    rep = {}
    s0, b0 = bn_fold(64)
    rep["conv1_w"] = fold_conv_bn(init_conv(keys[0], 7, 7, 3, 64), s0)
    rep["conv1_b"] = b0
    inpl = 64
    rep["layer1"], inpl = make_layer(keys[1], inpl, 64, 3, 1)
    rep["layer2"], inpl = make_layer(keys[2], inpl, 128, 4, 2)
    rep["layer3"], inpl = make_layer(keys[3], inpl, 256, 6, 2)
    c = inpl  # 1024
    params = {"repnet": rep, "c": c, "d": 14}   # d probed at 224x224 like the module
    inplanes = 2 * c
    params["layer4"], inplanes = make_layer(keys[4], inplanes, 128, 4, 2)
    params["layer5"], inplanes = make_layer(keys[5], inplanes, 64, 3, 2)
    # fc: Linear(256,64) + BN1d(64, eval) + ReLU ; Linear(64,1) + Sigmoid
    k1, k2 = jax.random.split(keys[6])
    fc1_w = jax.random.uniform(k1, (256, 64), jnp.float32, -1.0 / 16.0, 1.0 / 16.0)
    fc1_b = jax.random.uniform(k2, (64,), jnp.float32, -1.0 / 16.0, 1.0 / 16.0)
    bn_s, bn_b = bn_fold(64)
    params["fc1_w"] = (fc1_w * bn_s[None, :]).astype(jnp.bfloat16)
    params["fc1_b"] = fc1_b * bn_s + bn_b
    k3, k4 = jax.random.split(keys[7])
    params["fc2_w"] = jax.random.uniform(k3, (64, 1), jnp.float32,
                                         -0.125, 0.125).astype(jnp.bfloat16)
    params["fc2_b"] = jax.random.uniform(k4, (1,), jnp.float32, -0.125, 0.125)
    return params


# ---------------------------------------------------------------------------
# Compare.forward (train=True branch -> MSE loss)
# ---------------------------------------------------------------------------
def compare_forward(params, support_x, support_y, query_x, query_y):
    # support_x: [b, setsz, 3, H, W] (NCHW like PyTorch), support_y: [b, setsz]
    b, setsz, c_, h, w = support_x.shape
    querysz = query_x.shape[1]
    c, d = params["c"], params["d"]

    sx = jnp.transpose(support_x.reshape(b * setsz, c_, h, w),
                       (0, 2, 3, 1)).astype(jnp.bfloat16)
    qx = jnp.transpose(query_x.reshape(b * querysz, c_, h, w),
                       (0, 2, 3, 1)).astype(jnp.bfloat16)

    sf = repnet_forward(sx, params["repnet"])   # [b*setsz, d, d, c]
    qf = repnet_forward(qx, params["repnet"])
    assert sf.shape[1] == d and sf.shape[-1] == c

    sf = sf.reshape(b, setsz, d, d, c)
    qf = qf.reshape(b, querysz, d, d, c)
    sf_e = jnp.broadcast_to(sf[:, None], (b, querysz, setsz, d, d, c))
    qf_e = jnp.broadcast_to(qf[:, :, None], (b, querysz, setsz, d, d, c))
    comb = jnp.concatenate([sf_e, qf_e], axis=-1)          # channel concat (2c)
    x = comb.reshape(b * querysz * setsz, d, d, 2 * c)

    for p in params["layer4"]:
        x = bottleneck_forward(x, p)
    for p in params["layer5"]:
        x = bottleneck_forward(x, p)

    x = avg_pool_3x3(x)                                    # [P, 256] f32
    h1 = matmul_bias_act(x, params["fc1_w"], params["fc1_b"],
                         act="relu", out_dtype=jnp.bfloat16)
    score = matmul_bias_act(h1, params["fc2_w"], params["fc2_b"],
                            act="sigmoid", out_dtype=jnp.float32)
    score = score.reshape(b, querysz, setsz)

    s_yf = jnp.broadcast_to(support_y[:, None, :], (b, querysz, setsz))
    q_yf = jnp.broadcast_to(query_y[:, :, None], (b, querysz, setsz))
    label = (s_yf == q_yf).astype(jnp.float32)

    loss = squared_error_sum(score, label) / b
    return loss


if __name__ == "__main__":
    key = jax.random.PRNGKey(0)
    n_way, k_shot = 2, 1
    batchsz, setsz, querysz = 1, n_way * k_shot, 2
    H = W = 224   # the module probes repnet at 224x224 (d=14); forward requires it

    kp, ks, kq, ky = jax.random.split(key, 4)
    params = init_compare_params(kp)

    support_x = jax.random.normal(ks, (batchsz, setsz, 3, H, W), jnp.float32)
    query_x = jax.random.normal(kq, (batchsz, querysz, 3, H, W), jnp.float32)
    support_y = jnp.tile(jnp.repeat(jnp.arange(n_way, dtype=jnp.int32), k_shot)[None, :],
                         (batchsz, 1))
    query_y = jax.random.randint(ky, (batchsz, querysz), 0, n_way, dtype=jnp.int32)

    # End-to-end jit: params are closure constants (weights pre-folded/pre-cast
    # at init), so all pads/casts/im2col glue fuse into one XLA program.
    fwd = jax.jit(partial(compare_forward, params))
    loss = fwd(support_x, support_y, query_x, query_y)
    jax.block_until_ready(loss)
    assert loss.shape == () and bool(jnp.isfinite(loss))
    print("KERNEL_OK")
</pallas_src>

<mosaic_0001>
module attributes {stable_mosaic.version = 11 : i64} {
  func.func @_matmul_kernel(%arg0: i32, %arg1: i32, %arg2: i32, %arg3: memref<512x256xbf16, #tpu.memory_space<vmem>>, %arg4: memref<256x128xbf16, #tpu.memory_space<vmem>>, %arg5: memref<1x128xf32, #tpu.memory_space<vmem>>, %arg6: memref<512x128xbf16, #tpu.memory_space<vmem>>, %arg7: memref<512x128xf32, #tpu.memory_space<vmem>>) attributes {dimension_semantics = [#tpu.dimension_semantics<parallel>, #tpu.dimension_semantics<parallel>, #tpu.dimension_semantics<arbitrary>], iteration_bounds = array<i64: 49, 1, 1>, scalar_prefetch = 0 : i64, scratch_operands = 1 : i64, tpu.core_type = #tpu.core_type<tc>, window_params = [{transform_indices = @transform_0, window_bounds = array<i64: 512, 256>}, {transform_indices = @transform_1, window_bounds = array<i64: 256, 128>}, {transform_indices = @transform_2, window_bounds = array<i64: 1, 128>}, {transform_indices = @transform_3, window_bounds = array<i64: 512, 128>}]} {
    %c0_i32 = arith.constant 0 : i32
    %0 = arith.cmpi eq, %arg2, %c0_i32 : i32
    %1 = arith.extui %0 : i1 to i32
    %c0_i32_0 = arith.constant 0 : i32
    %2 = arith.cmpi ne, %1, %c0_i32_0 : i32
    scf.if %2 {
      %cst_10 = arith.constant 0.000000e+00 : f32
      %12 = vector.broadcast %cst_10 : f32 to vector<512x128xf32>
      %c0_11 = arith.constant 0 : index
      %c0_12 = arith.constant 0 : index
      %13 = vector.load %arg7[%c0_11, %c0_12] : memref<512x128xf32, #tpu.memory_space<vmem>>, vector<512x128xf32>
      tpu.vector_store %arg7[%c0_11, %c0_12], %12 {strides = array<i32>} : memref<512x128xf32, #tpu.memory_space<vmem>>, vector<512x128xf32>,
    } else {
    }
    %c0 = arith.constant 0 : index
    %c0_1 = arith.constant 0 : index
    %3 = vector.load %arg7[%c0, %c0_1] : memref<512x128xf32, #tpu.memory_space<vmem>>, vector<512x128xf32>
    %c0_2 = arith.constant 0 : index
    %c0_3 = arith.constant 0 : index
    %4 = vector.load %arg3[%c0_2, %c0_3] : memref<512x256xbf16, #tpu.memory_space<vmem>>, vector<512x256xbf16>
    %c0_4 = arith.constant 0 : index
    %c0_5 = arith.constant 0 : index
    %5 = vector.load %arg4[%c0_4, %c0_5] : memref<256x128xbf16, #tpu.memory_space<vmem>>, vector<256x128xbf16>
    %cst = arith.constant dense<0.000000e+00> : vector<512x128xf32>
    %6 = tpu.matmul %4, %5, %cst {dimension_numbers = #tpu.dot_dimension_numbers<[1], [0], [0], [1], [0, 0, 1, 1], [], []>} : vector<512x256xbf16>, vector<256x128xbf16>, vector<512x128xf32> -> vector<512x128xf32>
    %7 = arith.addf %3, %6 : vector<512x128xf32>
    %c0_6 = arith.constant 0 : index
    %c0_7 = arith.constant 0 : index
    %8 = vector.load %arg7[%c0_6, %c0_7] : memref<512x128xf32, #tpu.memory_space<vmem>>, vector<512x128xf32>
    tpu.vector_store %arg7[%c0_6, %c0_7], %7 {strides = array<i32>} : memref<512x128xf32, #tpu.memory_space<vmem>>, vector<512x128xf32>,
    %c0_i32_8 = arith.constant 0 : i32
    %9 = arith.cmpi eq, %arg2, %c0_i32_8 : i32
    %10 = arith.extui %9 : i1 to i32
    %c0_i32_9 = arith.constant 0 : i32
    %11 = arith.cmpi ne, %10, %c0_i32_9 : i32
    scf.if %11 {
      %c0_10 = arith.constant 0 : index
      %c0_11 = arith.constant 0 : index
      %12 = vector.load %arg7[%c0_10, %c0_11] : memref<512x128xf32, #tpu.memory_space<vmem>>, vector<512x128xf32>
      %c0_12 = arith.constant 0 : index
      %c0_13 = arith.constant 0 : index
      %13 = vector.load %arg5[%c0_12, %c0_13] : memref<1x128xf32, #tpu.memory_space<vmem>>, vector<1x128xf32>
      %14 = vector.broadcast %13 : vector<1x128xf32> to vector<512x128xf32>
      %15 = arith.addf %12, %14 : vector<512x128xf32>
      %cst_14 = arith.constant 0.000000e+00 : f32
      %16 = vector.broadcast %cst_14 : f32 to vector<512x128xf32>
      %17 = arith.subf %16, %15 : vector<512x128xf32>
      %18 = math.exp %17 : vector<512x128xf32>
      %cst_15 = arith.constant 1.000000e+00 : f32
      %19 = vector.broadcast %cst_15 : f32 to vector<512x128xf32>
      %20 = arith.addf %19, %18 : vector<512x128xf32>
      %cst_16 = arith.constant 1.000000e+00 : f32
      %21 = vector.broadcast %cst_16 : f32 to vector<512x128xf32>
      %22 = arith.divf %21, %20 : vector<512x128xf32>
      %23 = arith.truncf %22 : vector<512x128xf32> to vector<512x128xbf16>
      %c0_17 = arith.constant 0 : index
      %c0_18 = arith.constant 0 : index
      %24 = vector.load %arg6[%c0_17, %c0_18] : memref<512x128xbf16, #tpu.memory_space<vmem>>, vector<512x128xbf16>
      tpu.vector_store %arg6[%c0_17, %c0_18], %23 {strides = array<i32>} : memref<512x128xbf16, #tpu.memory_space<vmem>>, vector<512x128xbf16>,
    } else {
    }
    return
  }
  func.func @transform_0(%arg0: i32, %arg1: i32, %arg2: i32) -> (i32, i32) {
    %c0_i32 = arith.constant 0 : i32
    return %arg0, %arg2 : i32, i32
  }
  func.func @transform_1(%arg0: i32, %arg1: i32, %arg2: i32) -> (i32, i32) {
    %c0_i32 = arith.constant 0 : i32
    return %arg2, %arg1 : i32, i32
  }
  func.func @transform_2(%arg0: i32, %arg1: i32, %arg2: i32) -> (i32, i32) {
    %c0_i32 = arith.constant 0 : i32
    %c0_i32_0 = arith.constant 0 : i32
    return %c0_i32, %arg1 : i32, i32
  }
  func.func @transform_3(%arg0: i32, %arg1: i32, %arg2: i32) -> (i32, i32) {
    %c0_i32 = arith.constant 0 : i32
    return %arg0, %arg1 : i32, i32
  }
}

module attributes {stable_mosaic.version = 11 : i64} {
  func.func @_max9_kernel(%arg0: i32, %arg1: memref<9x512x128xbf16, #tpu.memory_space<vmem>>, %arg2: memref<512x128xbf16, #tpu.memory_space<vmem>>) attributes {dimension_semantics = [#tpu.dimension_semantics<arbitrary>], iteration_bounds = array<i64: 7>, scalar_prefetch = 0 : i64, scratch_operands = 0 : i64, tpu.core_type = #tpu.core_type<tc>, window_params = [{transform_indices = @transform_0, window_bounds = array<i64: 9, 512, 128>}, {transform_indices = @transform_1, window_bounds = array<i64: 512, 128>}]} {
    %c0 = arith.constant 0 : index
    %c0_0 = arith.constant 0 : index
    %c0_1 = arith.constant 0 : index
    %0 = vector.load %arg1[%c0, %c0_0, %c0_1] : memref<9x512x128xbf16, #tpu.memory_space<vmem>>, vector<9x512x128xbf16>
    %cst = arith.constant dense<0xFF80> : vector<512x128xbf16>
    %1 = vector.multi_reduction <maximumf>, %0, %cst [0] : vector<9x512x128xbf16> to vector<512x128xbf16>
    %c0_2 = arith.constant 0 : index
    %c0_3 = arith.constant 0 : index
    %2 = vector.load %arg2[%c0_2, %c0_3] : memref<512x128xbf16, #tpu.memory_space<vmem>>, vector<512x128xbf16>
    tpu.vector_store %arg2[%c0_2, %c0_3], %1 {strides = array<i32>} : memref<512x128xbf16, #tpu.memory_space<vmem>>, vector<512x128xbf16>,
    return
  }
  func.func @transform_0(%arg0: i32) -> (i32, i32, i32) {
    %c0_i32 = arith.constant 0 : i32
    %c0_i32_0 = arith.constant 0 : i32
    %c0_i32_1 = arith.constant 0 : i32
    return %c0_i32, %arg0, %c0_i32_0 : i32, i32, i32
  }
  func.func @transform_1(%arg0: i32) -> (i32, i32) {
    %c0_i32 = arith.constant 0 : i32
    %c0_i32_0 = arith.constant 0 : i32
    return %arg0, %c0_i32 : i32, i32
  }
}

module attributes {stable_mosaic.version = 11 : i64} {
  func.func @_matmul_kernel(%arg0: i32, %arg1: i32, %arg2: i32, %arg3: memref<512x128xbf16, #tpu.memory_space<vmem>>, %arg4: memref<128x128xbf16, #tpu.memory_space<vmem>>, %arg5: memref<1x128xf32, #tpu.memory_space<vmem>>, %arg6: memref<512x128xbf16, #tpu.memory_space<vmem>>, %arg7: memref<512x128xf32, #tpu.memory_space<vmem>>) attributes {dimension_semantics = [#tpu.dimension_semantics<parallel>, #tpu.dimension_semantics<parallel>, #tpu.dimension_semantics<arbitrary>], iteration_bounds = array<i64: 13, 1, 1>, scalar_prefetch = 0 : i64, scratch_operands = 1 : i64, tpu.core_type = #tpu.core_type<tc>, window_params = [{transform_indices = @transform_0, window_bounds = array<i64: 512, 128>}, {transform_indices = @transform_1, window_bounds = array<i64: 128, 128>}, {transform_indices = @transform_2, window_bounds = array<i64: 1, 128>}, {transform_indices = @transform_3, window_bounds = array<i64: 512, 128>}]} {
    %c0_i32 = arith.constant 0 : i32
    %0 = arith.cmpi eq, %arg2, %c0_i32 : i32
    %1 = arith.extui %0 : i1 to i32
    %c0_i32_0 = arith.constant 0 : i32
    %2 = arith.cmpi ne, %1, %c0_i32_0 : i32
    scf.if %2 {
      %cst_10 = arith.constant 0.000000e+00 : f32
      %12 = vector.broadcast %cst_10 : f32 to vector<512x128xf32>
      %c0_11 = arith.constant 0 : index
      %c0_12 = arith.constant 0 : index
      %13 = vector.load %arg7[%c0_11, %c0_12] : memref<512x128xf32, #tpu.memory_space<vmem>>, vector<512x128xf32>
      tpu.vector_store %arg7[%c0_11, %c0_12], %12 {strides = array<i32>} : memref<512x128xf32, #tpu.memory_space<vmem>>, vector<512x128xf32>,
    } else {
    }
    %c0 = arith.constant 0 : index
    %c0_1 = arith.constant 0 : index
    %3 = vector.load %arg7[%c0, %c0_1] : memref<512x128xf32, #tpu.memory_space<vmem>>, vector<512x128xf32>
    %c0_2 = arith.constant 0 : index
    %c0_3 = arith.constant 0 : index
    %4 = vector.load %arg3[%c0_2, %c0_3] : memref<512x128xbf16, #tpu.memory_space<vmem>>, vector<512x128xbf16>
    %c0_4 = arith.constant 0 : index
    %c0_5 = arith.constant 0 : index
    %5 = vector.load %arg4[%c0_4, %c0_5] : memref<128x128xbf16, #tpu.memory_space<vmem>>, vector<128x128xbf16>
    %cst = arith.constant dense<0.000000e+00> : vector<512x128xf32>
    %6 = tpu.matmul %4, %5, %cst {dimension_numbers = #tpu.dot_dimension_numbers<[1], [0], [0], [1], [0, 0, 1, 1], [], []>} : vector<512x128xbf16>, vector<128x128xbf16>, vector<512x128xf32> -> vector<512x128xf32>
    %7 = arith.addf %3, %6 : vector<512x128xf32>
    %c0_6 = arith.constant 0 : index
    %c0_7 = arith.constant 0 : index
    %8 = vector.load %arg7[%c0_6, %c0_7] : memref<512x128xf32, #tpu.memory_space<vmem>>, vector<512x128xf32>
    tpu.vector_store %arg7[%c0_6, %c0_7], %7 {strides = array<i32>} : memref<512x128xf32, #tpu.memory_space<vmem>>, vector<512x128xf32>,
    %c0_i32_8 = arith.constant 0 : i32
    %9 = arith.cmpi eq, %arg2, %c0_i32_8 : i32
    %10 = arith.extui %9 : i1 to i32
    %c0_i32_9 = arith.constant 0 : i32
    %11 = arith.cmpi ne, %10, %c0_i32_9 : i32
    scf.if %11 {
      %c0_10 = arith.constant 0 : index
      %c0_11 = arith.constant 0 : index
      %12 = vector.load %arg7[%c0_10, %c0_11] : memref<512x128xf32, #tpu.memory_space<vmem>>, vector<512x128xf32>
      %c0_12 = arith.constant 0 : index
      %c0_13 = arith.constant 0 : index
      %13 = vector.load %arg5[%c0_12, %c0_13] : memref<1x128xf32, #tpu.memory_space<vmem>>, vector<1x128xf32>
      %14 = vector.broadcast %13 : vector<1x128xf32> to vector<512x128xf32>
      %15 = arith.addf %12, %14 : vector<512x128xf32>
      %cst_14 = arith.constant 0.000000e+00 : f32
      %16 = vector.broadcast %cst_14 : f32 to vector<512x128xf32>
      %17 = arith.maximumf %15, %16 : vector<512x128xf32>
      %18 = arith.truncf %17 : vector<512x128xf32> to vector<512x128xbf16>
      %c0_15 = arith.constant 0 : index
      %c0_16 = arith.constant 0 : index
      %19 = vector.load %arg6[%c0_15, %c0_16] : memref<512x128xbf16, #tpu.memory_space<vmem>>, vector<512x128xbf16>
      tpu.vector_store %arg6[%c0_15, %c0_16], %18 {strides = array<i32>} : memref<512x128xbf16, #tpu.memory_space<vmem>>, vector<512x128xbf16>,
    } else {
    }
    return
  }
  func.func @transform_0(%arg0: i32, %arg1: i32, %arg2: i32) -> (i32, i32) {
    %c0_i32 = arith.constant 0 : i32
    return %arg0, %arg2 : i32, i32
  }
  func.func @transform_1(%arg0: i32, %arg1: i32, %arg2: i32) -> (i32, i32) {
    %c0_i32 = arith.constant 0 : i32
    return %arg2, %arg1 : i32, i32
  }
  func.func @transform_2(%arg0: i32, %arg1: i32, %arg2: i32) -> (i32, i32) {
    %c0_i32 = arith.constant 0 : i32
    %c0_i32_0 = arith.constant 0 : i32
    return %c0_i32, %arg1 : i32, i32
  }
  func.func @transform_3(%arg0: i32, %arg1: i32, %arg2: i32) -> (i32, i32) {
    %c0_i32 = arith.constant 0 : i32
    return %arg0, %arg1 : i32, i32
  }
}

module attributes {stable_mosaic.version = 11 : i64} {
  func.func @_matmul_kernel(%arg0: i32, %arg1: i32, %arg2: i32, %arg3: memref<512x640xbf16, #tpu.memory_space<vmem>>, %arg4: memref<640x128xbf16, #tpu.memory_space<vmem>>, %arg5: memref<1x128xf32, #tpu.memory_space<vmem>>, %arg6: memref<512x128xbf16, #tpu.memory_space<vmem>>, %arg7: memref<512x128xf32, #tpu.memory_space<vmem>>) attributes {dimension_semantics = [#tpu.dimension_semantics<parallel>, #tpu.dimension_semantics<parallel>, #tpu.dimension_semantics<arbitrary>], iteration_bounds = array<i64: 13, 1, 1>, scalar_prefetch = 0 : i64, scratch_operands = 1 : i64, tpu.core_type = #tpu.core_type<tc>, window_params = [{transform_indices = @transform_0, window_bounds = array<i64: 512, 640>}, {transform_indices = @transform_1, window_bounds = array<i64: 640, 128>}, {transform_indices = @transform_2, window_bounds = array<i64: 1, 128>}, {transform_indices = @transform_3, window_bounds = array<i64: 512, 128>}]} {
    %c0_i32 = arith.constant 0 : i32
    %0 = arith.cmpi eq, %arg2, %c0_i32 : i32
    %1 = arith.extui %0 : i1 to i32
    %c0_i32_0 = arith.constant 0 : i32
    %2 = arith.cmpi ne, %1, %c0_i32_0 : i32
    scf.if %2 {
      %cst_10 = arith.constant 0.000000e+00 : f32
      %12 = vector.broadcast %cst_10 : f32 to vector<512x128xf32>
      %c0_11 = arith.constant 0 : index
      %c0_12 = arith.constant 0 : index
      %13 = vector.load %arg7[%c0_11, %c0_12] : memref<512x128xf32, #tpu.memory_space<vmem>>, vector<512x128xf32>
      tpu.vector_store %arg7[%c0_11, %c0_12], %12 {strides = array<i32>} : memref<512x128xf32, #tpu.memory_space<vmem>>, vector<512x128xf32>,
    } else {
    }
    %c0 = arith.constant 0 : index
    %c0_1 = arith.constant 0 : index
    %3 = vector.load %arg7[%c0, %c0_1] : memref<512x128xf32, #tpu.memory_space<vmem>>, vector<512x128xf32>
    %c0_2 = arith.constant 0 : index
    %c0_3 = arith.constant 0 : index
    %4 = vector.load %arg3[%c0_2, %c0_3] : memref<512x640xbf16, #tpu.memory_space<vmem>>, vector<512x640xbf16>
    %c0_4 = arith.constant 0 : index
    %c0_5 = arith.constant 0 : index
    %5 = vector.load %arg4[%c0_4, %c0_5] : memref<640x128xbf16, #tpu.memory_space<vmem>>, vector<640x128xbf16>
    %cst = arith.constant dense<0.000000e+00> : vector<512x128xf32>
    %6 = tpu.matmul %4, %5, %cst {dimension_numbers = #tpu.dot_dimension_numbers<[1], [0], [0], [1], [0, 0, 1, 1], [], []>} : vector<512x640xbf16>, vector<640x128xbf16>, vector<512x128xf32> -> vector<512x128xf32>
    %7 = arith.addf %3, %6 : vector<512x128xf32>
    %c0_6 = arith.constant 0 : index
    %c0_7 = arith.constant 0 : index
    %8 = vector.load %arg7[%c0_6, %c0_7] : memref<512x128xf32, #tpu.memory_space<vmem>>, vector<512x128xf32>
    tpu.vector_store %arg7[%c0_6, %c0_7], %7 {strides = array<i32>} : memref<512x128xf32, #tpu.memory_space<vmem>>, vector<512x128xf32>,
    %c0_i32_8 = arith.constant 0 : i32
    %9 = arith.cmpi eq, %arg2, %c0_i32_8 : i32
    %10 = arith.extui %9 : i1 to i32
    %c0_i32_9 = arith.constant 0 : i32
    %11 = arith.cmpi ne, %10, %c0_i32_9 : i32
    scf.if %11 {
      %c0_10 = arith.constant 0 : index
      %c0_11 = arith.constant 0 : index
      %12 = vector.load %arg7[%c0_10, %c0_11] : memref<512x128xf32, #tpu.memory_space<vmem>>, vector<512x128xf32>
      %c0_12 = arith.constant 0 : index
      %c0_13 = arith.constant 0 : index
      %13 = vector.load %arg5[%c0_12, %c0_13] : memref<1x128xf32, #tpu.memory_space<vmem>>, vector<1x128xf32>
      %14 = vector.broadcast %13 : vector<1x128xf32> to vector<512x128xf32>
      %15 = arith.addf %12, %14 : vector<512x128xf32>
      %cst_14 = arith.constant 0.000000e+00 : f32
      %16 = vector.broadcast %cst_14 : f32 to vector<512x128xf32>
      %17 = arith.maximumf %15, %16 : vector<512x128xf32>
      %18 = arith.truncf %17 : vector<512x128xf32> to vector<512x128xbf16>
      %c0_15 = arith.constant 0 : index
      %c0_16 = arith.constant 0 : index
      %19 = vector.load %arg6[%c0_15, %c0_16] : memref<512x128xbf16, #tpu.memory_space<vmem>>, vector<512x128xbf16>
      tpu.vector_store %arg6[%c0_15, %c0_16], %18 {strides = array<i32>} : memref<512x128xbf16, #tpu.memory_space<vmem>>, vector<512x128xbf16>,
    } else {
    }
    return
  }
  func.func @transform_0(%arg0: i32, %arg1: i32, %arg2: i32) -> (i32, i32) {
    %c0_i32 = arith.constant 0 : i32
    return %arg0, %arg2 : i32, i32
  }
  func.func @transform_1(%arg0: i32, %arg1: i32, %arg2: i32) -> (i32, i32) {
    %c0_i32 = arith.constant 0 : i32
    return %arg2, %arg1 : i32, i32
  }
  func.func @transform_2(%arg0: i32, %arg1: i32, %arg2: i32) -> (i32, i32) {
    %c0_i32 = arith.constant 0 : i32
    %c0_i32_0 = arith.constant 0 : i32
    return %c0_i32, %arg1 : i32, i32
  }
  func.func @transform_3(%arg0: i32, %arg1: i32, %arg2: i32) -> (i32, i32) {
    %c0_i32 = arith.constant 0 : i32
    return %arg0, %arg1 : i32, i32
  }
}

module attributes {stable_mosaic.version = 11 : i64} {
  func.func @_matmul_kernel(%arg0: i32, %arg1: i32, %arg2: i32, %arg3: memref<512x128xbf16, #tpu.memory_space<vmem>>, %arg4: memref<128x256xbf16, #tpu.memory_space<vmem>>, %arg5: memref<1x256xf32, #tpu.memory_space<vmem>>, %arg6: memref<512x256xbf16, #tpu.memory_space<vmem>>, %arg7: memref<512x256xf32, #tpu.memory_space<vmem>>) attributes {dimension_semantics = [#tpu.dimension_semantics<parallel>, #tpu.dimension_semantics<parallel>, #tpu.dimension_semantics<arbitrary>], iteration_bounds = array<i64: 13, 1, 1>, scalar_prefetch = 0 : i64, scratch_operands = 1 : i64, tpu.core_type = #tpu.core_type<tc>, window_params = [{transform_indices = @transform_0, window_bounds = array<i64: 512, 128>}, {transform_indices = @transform_1, window_bounds = array<i64: 128, 256>}, {transform_indices = @transform_2, window_bounds = array<i64: 1, 256>}, {transform_indices = @transform_3, window_bounds = array<i64: 512, 256>}]} {
    %c0_i32 = arith.constant 0 : i32
    %0 = arith.cmpi eq, %arg2, %c0_i32 : i32
    %1 = arith.extui %0 : i1 to i32
    %c0_i32_0 = arith.constant 0 : i32
    %2 = arith.cmpi ne, %1, %c0_i32_0 : i32
    scf.if %2 {
      %cst_10 = arith.constant 0.000000e+00 : f32
      %12 = vector.broadcast %cst_10 : f32 to vector<512x256xf32>
      %c0_11 = arith.constant 0 : index
      %c0_12 = arith.constant 0 : index
      %13 = vector.load %arg7[%c0_11, %c0_12] : memref<512x256xf32, #tpu.memory_space<vmem>>, vector<512x256xf32>
      tpu.vector_store %arg7[%c0_11, %c0_12], %12 {strides = array<i32>} : memref<512x256xf32, #tpu.memory_space<vmem>>, vector<512x256xf32>,
    } else {
    }
    %c0 = arith.constant 0 : index
    %c0_1 = arith.constant 0 : index
    %3 = vector.load %arg7[%c0, %c0_1] : memref<512x256xf32, #tpu.memory_space<vmem>>, vector<512x256xf32>
    %c0_2 = arith.constant 0 : index
    %c0_3 = arith.constant 0 : index
    %4 = vector.load %arg3[%c0_2, %c0_3] : memref<512x128xbf16, #tpu.memory_space<vmem>>, vector<512x128xbf16>
    %c0_4 = arith.constant 0 : index
    %c0_5 = arith.constant 0 : index
    %5 = vector.load %arg4[%c0_4, %c0_5] : memref<128x256xbf16, #tpu.memory_space<vmem>>, vector<128x256xbf16>
    %cst = arith.constant dense<0.000000e+00> : vector<512x256xf32>
    %6 = tpu.matmul %4, %5, %cst {dimension_numbers = #tpu.dot_dimension_numbers<[1], [0], [0], [1], [0, 0, 1, 1], [], []>} : vector<512x128xbf16>, vector<128x256xbf16>, vector<512x256xf32> -> vector<512x256xf32>
    %7 = arith.addf %3, %6 : vector<512x256xf32>
    %c0_6 = arith.constant 0 : index
    %c0_7 = arith.constant 0 : index
    %8 = vector.load %arg7[%c0_6, %c0_7] : memref<512x256xf32, #tpu.memory_space<vmem>>, vector<512x256xf32>
    tpu.vector_store %arg7[%c0_6, %c0_7], %7 {strides = array<i32>} : memref<512x256xf32, #tpu.memory_space<vmem>>, vector<512x256xf32>,
    %c0_i32_8 = arith.constant 0 : i32
    %9 = arith.cmpi eq, %arg2, %c0_i32_8 : i32
    %10 = arith.extui %9 : i1 to i32
    %c0_i32_9 = arith.constant 0 : i32
    %11 = arith.cmpi ne, %10, %c0_i32_9 : i32
    scf.if %11 {
      %c0_10 = arith.constant 0 : index
      %c0_11 = arith.constant 0 : index
      %12 = vector.load %arg7[%c0_10, %c0_11] : memref<512x256xf32, #tpu.memory_space<vmem>>, vector<512x256xf32>
      %c0_12 = arith.constant 0 : index
      %c0_13 = arith.constant 0 : index
      %13 = vector.load %arg5[%c0_12, %c0_13] : memref<1x256xf32, #tpu.memory_space<vmem>>, vector<1x256xf32>
      %14 = vector.broadcast %13 : vector<1x256xf32> to vector<512x256xf32>
      %15 = arith.addf %12, %14 : vector<512x256xf32>
      %16 = arith.truncf %15 : vector<512x256xf32> to vector<512x256xbf16>
      %c0_14 = arith.constant 0 : index
      %c0_15 = arith.constant 0 : index
      %17 = vector.load %arg6[%c0_14, %c0_15] : memref<512x256xbf16, #tpu.memory_space<vmem>>, vector<512x256xbf16>
      tpu.vector_store %arg6[%c0_14, %c0_15], %16 {strides = array<i32>} : memref<512x256xbf16, #tpu.memory_space<vmem>>, vector<512x256xbf16>,
    } else {
    }
    return
  }
  func.func @transform_0(%arg0: i32, %arg1: i32, %arg2: i32) -> (i32, i32) {
    %c0_i32 = arith.constant 0 : i32
    return %arg0, %arg2 : i32, i32
  }
  func.func @transform_1(%arg0: i32, %arg1: i32, %arg2: i32) -> (i32, i32) {
    %c0_i32 = arith.constant 0 : i32
    return %arg2, %arg1 : i32, i32
  }
  func.func @transform_2(%arg0: i32, %arg1: i32, %arg2: i32) -> (i32, i32) {
    %c0_i32 = arith.constant 0 : i32
    %c0_i32_0 = arith.constant 0 : i32
    return %c0_i32, %arg1 : i32, i32
  }
  func.func @transform_3(%arg0: i32, %arg1: i32, %arg2: i32) -> (i32, i32) {
    %c0_i32 = arith.constant 0 : i32
    return %arg0, %arg1 : i32, i32
  }
}

module attributes {stable_mosaic.version = 11 : i64} {
  func.func @_matmul_kernel(%arg0: i32, %arg1: i32, %arg2: i32, %arg3: memref<512x128xbf16, #tpu.memory_space<vmem>>, %arg4: memref<128x256xbf16, #tpu.memory_space<vmem>>, %arg5: memref<1x256xf32, #tpu.memory_space<vmem>>, %arg6: memref<512x256xbf16, #tpu.memory_space<vmem>>, %arg7: memref<512x256xf32, #tpu.memory_space<vmem>>) attributes {dimension_semantics = [#tpu.dimension_semantics<parallel>, #tpu.dimension_semantics<parallel>, #tpu.dimension_semantics<arbitrary>], iteration_bounds = array<i64: 13, 1, 1>, scalar_prefetch = 0 : i64, scratch_operands = 1 : i64, tpu.core_type = #tpu.core_type<tc>, window_params = [{transform_indices = @transform_0, window_bounds = array<i64: 512, 128>}, {transform_indices = @transform_1, window_bounds = array<i64: 128, 256>}, {transform_indices = @transform_2, window_bounds = array<i64: 1, 256>}, {transform_indices = @transform_3, window_bounds = array<i64: 512, 256>}]} {
    %c0_i32 = arith.constant 0 : i32
    %0 = arith.cmpi eq, %arg2, %c0_i32 : i32
    %1 = arith.extui %0 : i1 to i32
    %c0_i32_0 = arith.constant 0 : i32
    %2 = arith.cmpi ne, %1, %c0_i32_0 : i32
    scf.if %2 {
      %cst_10 = arith.constant 0.000000e+00 : f32
      %12 = vector.broadcast %cst_10 : f32 to vector<512x256xf32>
      %c0_11 = arith.constant 0 : index
      %c0_12 = arith.constant 0 : index
      %13 = vector.load %arg7[%c0_11, %c0_12] : memref<512x256xf32, #tpu.memory_space<vmem>>, vector<512x256xf32>
      tpu.vector_store %arg7[%c0_11, %c0_12], %12 {strides = array<i32>} : memref<512x256xf32, #tpu.memory_space<vmem>>, vector<512x256xf32>,
    } else {
    }
    %c0 = arith.constant 0 : index
    %c0_1 = arith.constant 0 : index
    %3 = vector.load %arg7[%c0, %c0_1] : memref<512x256xf32, #tpu.memory_space<vmem>>, vector<512x256xf32>
    %c0_2 = arith.constant 0 : index
    %c0_3 = arith.constant 0 : index
    %4 = vector.load %arg3[%c0_2, %c0_3] : memref<512x128xbf16, #tpu.memory_space<vmem>>, vector<512x128xbf16>
    %c0_4 = arith.constant 0 : index
    %c0_5 = arith.constant 0 : index
    %5 = vector.load %arg4[%c0_4, %c0_5] : memref<128x256xbf16, #tpu.memory_space<vmem>>, vector<128x256xbf16>
    %cst = arith.constant dense<0.000000e+00> : vector<512x256xf32>
    %6 = tpu.matmul %4, %5, %cst {dimension_numbers = #tpu.dot_dimension_numbers<[1], [0], [0], [1], [0, 0, 1, 1], [], []>} : vector<512x128xbf16>, vector<128x256xbf16>, vector<512x256xf32> -> vector<512x256xf32>
    %7 = arith.addf %3, %6 : vector<512x256xf32>
    %c0_6 = arith.constant 0 : index
    %c0_7 = arith.constant 0 : index
    %8 = vector.load %arg7[%c0_6, %c0_7] : memref<512x256xf32, #tpu.memory_space<vmem>>, vector<512x256xf32>
    tpu.vector_store %arg7[%c0_6, %c0_7], %7 {strides = array<i32>} : memref<512x256xf32, #tpu.memory_space<vmem>>, vector<512x256xf32>,
    %c0_i32_8 = arith.constant 0 : i32
    %9 = arith.cmpi eq, %arg2, %c0_i32_8 : i32
    %10 = arith.extui %9 : i1 to i32
    %c0_i32_9 = arith.constant 0 : i32
    %11 = arith.cmpi ne, %10, %c0_i32_9 : i32
    scf.if %11 {
      %c0_10 = arith.constant 0 : index
      %c0_11 = arith.constant 0 : index
      %12 = vector.load %arg7[%c0_10, %c0_11] : memref<512x256xf32, #tpu.memory_space<vmem>>, vector<512x256xf32>
      %c0_12 = arith.constant 0 : index
      %c0_13 = arith.constant 0 : index
      %13 = vector.load %arg5[%c0_12, %c0_13] : memref<1x256xf32, #tpu.memory_space<vmem>>, vector<1x256xf32>
      %14 = vector.broadcast %13 : vector<1x256xf32> to vector<512x256xf32>
      %15 = arith.addf %12, %14 : vector<512x256xf32>
      %16 = arith.truncf %15 : vector<512x256xf32> to vector<512x256xbf16>
      %c0_14 = arith.constant 0 : index
      %c0_15 = arith.constant 0 : index
      %17 = vector.load %arg6[%c0_14, %c0_15] : memref<512x256xbf16, #tpu.memory_space<vmem>>, vector<512x256xbf16>
      tpu.vector_store %arg6[%c0_14, %c0_15], %16 {strides = array<i32>} : memref<512x256xbf16, #tpu.memory_space<vmem>>, vector<512x256xbf16>,
    } else {
    }
    return
  }
  func.func @transform_0(%arg0: i32, %arg1: i32, %arg2: i32) -> (i32, i32) {
    %c0_i32 = arith.constant 0 : i32
    return %arg0, %arg2 : i32, i32
  }
  func.func @transform_1(%arg0: i32, %arg1: i32, %arg2: i32) -> (i32, i32) {
    %c0_i32 = arith.constant 0 : i32
    return %arg2, %arg1 : i32, i32
  }
  func.func @transform_2(%arg0: i32, %arg1: i32, %arg2: i32) -> (i32, i32) {
    %c0_i32 = arith.constant 0 : i32
    %c0_i32_0 = arith.constant 0 : i32
    return %c0_i32, %arg1 : i32, i32
  }
  func.func @transform_3(%arg0: i32, %arg1: i32, %arg2: i32) -> (i32, i32) {
    %c0_i32 = arith.constant 0 : i32
    return %arg0, %arg1 : i32, i32
  }
}

module attributes {stable_mosaic.version = 11 : i64} {
  func.func @_add_relu_kernel(%arg0: i32, %arg1: memref<512x256xbf16, #tpu.memory_space<vmem>>, %arg2: memref<512x256xbf16, #tpu.memory_space<vmem>>, %arg3: memref<512x256xbf16, #tpu.memory_space<vmem>>) attributes {dimension_semantics = [#tpu.dimension_semantics<arbitrary>], iteration_bounds = array<i64: 13>, scalar_prefetch = 0 : i64, scratch_operands = 0 : i64, tpu.core_type = #tpu.core_type<tc>, window_params = [{transform_indices = @transform_0, window_bounds = array<i64: 512, 256>}, {transform_indices = @transform_1, window_bounds = array<i64: 512, 256>}, {transform_indices = @transform_2, window_bounds = array<i64: 512, 256>}]} {
    %c0 = arith.constant 0 : index
    %c0_0 = arith.constant 0 : index
    %0 = vector.load %arg1[%c0, %c0_0] : memref<512x256xbf16, #tpu.memory_space<vmem>>, vector<512x256xbf16>
    %1 = arith.extf %0 : vector<512x256xbf16> to vector<512x256xf32>
    %c0_1 = arith.constant 0 : index
    %c0_2 = arith.constant 0 : index
    %2 = vector.load %arg2[%c0_1, %c0_2] : memref<512x256xbf16, #tpu.memory_space<vmem>>, vector<512x256xbf16>
    %3 = arith.extf %2 : vector<512x256xbf16> to vector<512x256xf32>
    %4 = arith.addf %1, %3 : vector<512x256xf32>
    %cst = arith.constant 0.000000e+00 : f32
    %5 = vector.broadcast %cst : f32 to vector<512x256xf32>
    %6 = arith.maximumf %4, %5 : vector<512x256xf32>
    %7 = arith.truncf %6 : vector<512x256xf32> to vector<512x256xbf16>
    %c0_3 = arith.constant 0 : index
    %c0_4 = arith.constant 0 : index
    %8 = vector.load %arg3[%c0_3, %c0_4] : memref<512x256xbf16, #tpu.memory_space<vmem>>, vector<512x256xbf16>
    tpu.vector_store %arg3[%c0_3, %c0_4], %7 {strides = array<i32>} : memref<512x256xbf16, #tpu.memory_space<vmem>>, vector<512x256xbf16>,
    return
  }
  func.func @transform_0(%arg0: i32) -> (i32, i32) {
    %c0_i32 = arith.constant 0 : i32
    %c0_i32_0 = arith.constant 0 : i32
    return %arg0, %c0_i32 : i32, i32
  }
  func.func @transform_1(%arg0: i32) -> (i32, i32) {
    %c0_i32 = arith.constant 0 : i32
    %c0_i32_0 = arith.constant 0 : i32
    return %arg0, %c0_i32 : i32, i32
  }
  func.func @transform_2(%arg0: i32) -> (i32, i32) {
    %c0_i32 = arith.constant 0 : i32
    %c0_i32_0 = arith.constant 0 : i32
    return %arg0, %c0_i32 : i32, i32
  }
}

module attributes {stable_mosaic.version = 11 : i64} {
  func.func @_matmul_kernel(%arg0: i32, %arg1: i32, %arg2: i32, %arg3: memref<512x256xbf16, #tpu.memory_space<vmem>>, %arg4: memref<256x128xbf16, #tpu.memory_space<vmem>>, %arg5: memref<1x128xf32, #tpu.memory_space<vmem>>, %arg6: memref<512x128xbf16, #tpu.memory_space<vmem>>, %arg7: memref<512x128xf32, #tpu.memory_space<vmem>>) attributes {dimension_semantics = [#tpu.dimension_semantics<parallel>, #tpu.dimension_semantics<parallel>, #tpu.dimension_semantics<arbitrary>], iteration_bounds = array<i64: 13, 1, 1>, scalar_prefetch = 0 : i64, scratch_operands = 1 : i64, tpu.core_type = #tpu.core_type<tc>, window_params = [{transform_indices = @transform_0, window_bounds = array<i64: 512, 256>}, {transform_indices = @transform_1, window_bounds = array<i64: 256, 128>}, {transform_indices = @transform_2, window_bounds = array<i64: 1, 128>}, {transform_indices = @transform_3, window_bounds = array<i64: 512, 128>}]} {
    %c0_i32 = arith.constant 0 : i32
    %0 = arith.cmpi eq, %arg2, %c0_i32 : i32
    %1 = arith.extui %0 : i1 to i32
    %c0_i32_0 = arith.constant 0 : i32
    %2 = arith.cmpi ne, %1, %c0_i32_0 : i32
    scf.if %2 {
      %cst_10 = arith.constant 0.000000e+00 : f32
      %12 = vector.broadcast %cst_10 : f32 to vector<512x128xf32>
      %c0_11 = arith.constant 0 : index
      %c0_12 = arith.constant 0 : index
      %13 = vector.load %arg7[%c0_11, %c0_12] : memref<512x128xf32, #tpu.memory_space<vmem>>, vector<512x128xf32>
      tpu.vector_store %arg7[%c0_11, %c0_12], %12 {strides = array<i32>} : memref<512x128xf32, #tpu.memory_space<vmem>>, vector<512x128xf32>,
    } else {
    }
    %c0 = arith.constant 0 : index
    %c0_1 = arith.constant 0 : index
    %3 = vector.load %arg7[%c0, %c0_1] : memref<512x128xf32, #tpu.memory_space<vmem>>, vector<512x128xf32>
    %c0_2 = arith.constant 0 : index
    %c0_3 = arith.constant 0 : index
    %4 = vector.load %arg3[%c0_2, %c0_3] : memref<512x256xbf16, #tpu.memory_space<vmem>>, vector<512x256xbf16>
    %c0_4 = arith.constant 0 : index
    %c0_5 = arith.constant 0 : index
    %5 = vector.load %arg4[%c0_4, %c0_5] : memref<256x128xbf16, #tpu.memory_space<vmem>>, vector<256x128xbf16>
    %cst = arith.constant dense<0.000000e+00> : vector<512x128xf32>
    %6 = tpu.matmul %4, %5, %cst {dimension_numbers = #tpu.dot_dimension_numbers<[1], [0], [0], [1], [0, 0, 1, 1], [], []>} : vector<512x256xbf16>, vector<256x128xbf16>, vector<512x128xf32> -> vector<512x128xf32>
    %7 = arith.addf %3, %6 : vector<512x128xf32>
    %c0_6 = arith.constant 0 : index
    %c0_7 = arith.constant 0 : index
    %8 = vector.load %arg7[%c0_6, %c0_7] : memref<512x128xf32, #tpu.memory_space<vmem>>, vector<512x128xf32>
    tpu.vector_store %arg7[%c0_6, %c0_7], %7 {strides = array<i32>} : memref<512x128xf32, #tpu.memory_space<vmem>>, vector<512x128xf32>,
    %c0_i32_8 = arith.constant 0 : i32
    %9 = arith.cmpi eq, %arg2, %c0_i32_8 : i32
    %10 = arith.extui %9 : i1 to i32
    %c0_i32_9 = arith.constant 0 : i32
    %11 = arith.cmpi ne, %10, %c0_i32_9 : i32
    scf.if %11 {
      %c0_10 = arith.constant 0 : index
      %c0_11 = arith.constant 0 : index
      %12 = vector.load %arg7[%c0_10, %c0_11] : memref<512x128xf32, #tpu.memory_space<vmem>>, vector<512x128xf32>
      %c0_12 = arith.constant 0 : index
      %c0_13 = arith.constant 0 : index
      %13 = vector.load %arg5[%c0_12, %c0_13] : memref<1x128xf32, #tpu.memory_space<vmem>>, vector<1x128xf32>
      %14 = vector.broadcast %13 : vector<1x128xf32> to vector<512x128xf32>
      %15 = arith.addf %12, %14 : vector<512x128xf32>
      %cst_14 = arith.constant 0.000000e+00 : f32
      %16 = vector.broadcast %cst_14 : f32 to vector<512x128xf32>
      %17 = arith.maximumf %15, %16 : vector<512x128xf32>
      %18 = arith.truncf %17 : vector<512x128xf32> to vector<512x128xbf16>
      %c0_15 = arith.constant 0 : index
      %c0_16 = arith.constant 0 : index
      %19 = vector.load %arg6[%c0_15, %c0_16] : memref<512x128xbf16, #tpu.memory_space<vmem>>, vector<512x128xbf16>
      tpu.vector_store %arg6[%c0_15, %c0_16], %18 {strides = array<i32>} : memref<512x128xbf16, #tpu.memory_space<vmem>>, vector<512x128xbf16>,
    } else {
    }
    return
  }
  func.func @transform_0(%arg0: i32, %arg1: i32, %arg2: i32) -> (i32, i32) {
    %c0_i32 = arith.constant 0 : i32
    return %arg0, %arg2 : i32, i32
  }
  func.func @transform_1(%arg0: i32, %arg1: i32, %arg2: i32) -> (i32, i32) {
    %c0_i32 = arith.constant 0 : i32
    return %arg2, %arg1 : i32, i32
  }
  func.func @transform_2(%arg0: i32, %arg1: i32, %arg2: i32) -> (i32, i32) {
    %c0_i32 = arith.constant 0 : i32
    %c0_i32_0 = arith.constant 0 : i32
    return %c0_i32, %arg1 : i32, i32
  }
  func.func @transform_3(%arg0: i32, %arg1: i32, %arg2: i32) -> (i32, i32) {
    %c0_i32 = arith.constant 0 : i32
    return %arg0, %arg1 : i32, i32
  }
}

module attributes {stable_mosaic.version = 11 : i64} {
  func.func @_matmul_kernel(%arg0: i32, %arg1: i32, %arg2: i32, %arg3: memref<512x384xbf16, #tpu.memory_space<vmem>>, %arg4: memref<384x128xbf16, #tpu.memory_space<vmem>>, %arg5: memref<1x128xf32, #tpu.memory_space<vmem>>, %arg6: memref<512x128xbf16, #tpu.memory_space<vmem>>, %arg7: memref<512x128xf32, #tpu.memory_space<vmem>>) attributes {dimension_semantics = [#tpu.dimension_semantics<parallel>, #tpu.dimension_semantics<parallel>, #tpu.dimension_semantics<arbitrary>], iteration_bounds = array<i64: 4, 1, 3>, scalar_prefetch = 0 : i64, scratch_operands = 1 : i64, tpu.core_type = #tpu.core_type<tc>, window_params = [{transform_indices = @transform_0, window_bounds = array<i64: 512, 384>}, {transform_indices = @transform_1, window_bounds = array<i64: 384, 128>}, {transform_indices = @transform_2, window_bounds = array<i64: 1, 128>}, {transform_indices = @transform_3, window_bounds = array<i64: 512, 128>}]} {
    %c0_i32 = arith.constant 0 : i32
    %0 = arith.cmpi eq, %arg2, %c0_i32 : i32
    %1 = arith.extui %0 : i1 to i32
    %c0_i32_0 = arith.constant 0 : i32
    %2 = arith.cmpi ne, %1, %c0_i32_0 : i32
    scf.if %2 {
      %cst_9 = arith.constant 0.000000e+00 : f32
      %12 = vector.broadcast %cst_9 : f32 to vector<512x128xf32>
      %c0_10 = arith.constant 0 : index
      %c0_11 = arith.constant 0 : index
      %13 = vector.load %arg7[%c0_10, %c0_11] : memref<512x128xf32, #tpu.memory_space<vmem>>, vector<512x128xf32>
      tpu.vector_store %arg7[%c0_10, %c0_11], %12 {strides = array<i32>} : memref<512x128xf32, #tpu.memory_space<vmem>>, vector<512x128xf32>,
    } else {
    }
    %c0 = arith.constant 0 : index
    %c0_1 = arith.constant 0 : index
    %3 = vector.load %arg7[%c0, %c0_1] : memref<512x128xf32, #tpu.memory_space<vmem>>, vector<512x128xf32>
    %c0_2 = arith.constant 0 : index
    %c0_3 = arith.constant 0 : index
    %4 = vector.load %arg3[%c0_2, %c0_3] : memref<512x384xbf16, #tpu.memory_space<vmem>>, vector<512x384xbf16>
    %c0_4 = arith.constant 0 : index
    %c0_5 = arith.constant 0 : index
    %5 = vector.load %arg4[%c0_4, %c0_5] : memref<384x128xbf16, #tpu.memory_space<vmem>>, vector<384x128xbf16>
    %cst = arith.constant dense<0.000000e+00> : vector<512x128xf32>
    %6 = tpu.matmul %4, %5, %cst {dimension_numbers = #tpu.dot_dimension_numbers<[1], [0], [0], [1], [0, 0, 1, 1], [], []>} : vector<512x384xbf16>, vector<384x128xbf16>, vector<512x128xf32> -> vector<512x128xf32>
    %7 = arith.addf %3, %6 : vector<512x128xf32>
    %c0_6 = arith.constant 0 : index
    %c0_7 = arith.constant 0 : index
    %8 = vector.load %arg7[%c0_6, %c0_7] : memref<512x128xf32, #tpu.memory_space<vmem>>, vector<512x128xf32>
    tpu.vector_store %arg7[%c0_6, %c0_7], %7 {strides = array<i32>} : memref<512x128xf32, #tpu.memory_space<vmem>>, vector<512x128xf32>,
    %c2_i32 = arith.constant 2 : i32
    %9 = arith.cmpi eq, %arg2, %c2_i32 : i32
    %10 = arith.extui %9 : i1 to i32
    %c0_i32_8 = arith.constant 0 : i32
    %11 = arith.cmpi ne, %10, %c0_i32_8 : i32
    scf.if %11 {
      %c0_9 = arith.constant 0 : index
      %c0_10 = arith.constant 0 : index
      %12 = vector.load %arg7[%c0_9, %c0_10] : memref<512x128xf32, #tpu.memory_space<vmem>>, vector<512x128xf32>
      %c0_11 = arith.constant 0 : index
      %c0_12 = arith.constant 0 : index
      %13 = vector.load %arg5[%c0_11, %c0_12] : memref<1x128xf32, #tpu.memory_space<vmem>>, vector<1x128xf32>
      %14 = vector.broadcast %13 : vector<1x128xf32> to vector<512x128xf32>
      %15 = arith.addf %12, %14 : vector<512x128xf32>
      %cst_13 = arith.constant 0.000000e+00 : f32
      %16 = vector.broadcast %cst_13 : f32 to vector<512x128xf32>
      %17 = arith.maximumf %15, %16 : vector<512x128xf32>
      %18 = arith.truncf %17 : vector<512x128xf32> to vector<512x128xbf16>
      %c0_14 = arith.constant 0 : index
      %c0_15 = arith.constant 0 : index
      %19 = vector.load %arg6[%c0_14, %c0_15] : memref<512x128xbf16, #tpu.memory_space<vmem>>, vector<512x128xbf16>
      tpu.vector_store %arg6[%c0_14, %c0_15], %18 {strides = array<i32>} : memref<512x128xbf16, #tpu.memory_space<vmem>>, vector<512x128xbf16>,
    } else {
    }
    return
  }
  func.func @transform_0(%arg0: i32, %arg1: i32, %arg2: i32) -> (i32, i32) {
    %c0_i32 = arith.constant 0 : i32
    return %arg0, %arg2 : i32, i32
  }
  func.func @transform_1(%arg0: i32, %arg1: i32, %arg2: i32) -> (i32, i32) {
    %c0_i32 = arith.constant 0 : i32
    return %arg2, %arg1 : i32, i32
  }
  func.func @transform_2(%arg0: i32, %arg1: i32, %arg2: i32) -> (i32, i32) {
    %c0_i32 = arith.constant 0 : i32
    %c0_i32_0 = arith.constant 0 : i32
    return %c0_i32, %arg1 : i32, i32
  }
  func.func @transform_3(%arg0: i32, %arg1: i32, %arg2: i32) -> (i32, i32) {
    %c0_i32 = arith.constant 0 : i32
    return %arg0, %arg1 : i32, i32
  }
}

module attributes {stable_mosaic.version = 11 : i64} {
  func.func @_matmul_kernel(%arg0: i32, %arg1: i32, %arg2: i32, %arg3: memref<512x128xbf16, #tpu.memory_space<vmem>>, %arg4: memref<128x512xbf16, #tpu.memory_space<vmem>>, %arg5: memref<1x512xf32, #tpu.memory_space<vmem>>, %arg6: memref<512x512xbf16, #tpu.memory_space<vmem>>, %arg7: memref<512x512xf32, #tpu.memory_space<vmem>>) attributes {dimension_semantics = [#tpu.dimension_semantics<parallel>, #tpu.dimension_semantics<parallel>, #tpu.dimension_semantics<arbitrary>], iteration_bounds = array<i64: 4, 1, 1>, scalar_prefetch = 0 : i64, scratch_operands = 1 : i64, tpu.core_type = #tpu.core_type<tc>, window_params = [{transform_indices = @transform_0, window_bounds = array<i64: 512, 128>}, {transform_indices = @transform_1, window_bounds = array<i64: 128, 512>}, {transform_indices = @transform_2, window_bounds = array<i64: 1, 512>}, {transform_indices = @transform_3, window_bounds = array<i64: 512, 512>}]} {
    %c0_i32 = arith.constant 0 : i32
    %0 = arith.cmpi eq, %arg2, %c0_i32 : i32
    %1 = arith.extui %0 : i1 to i32
    %c0_i32_0 = arith.constant 0 : i32
    %2 = arith.cmpi ne, %1, %c0_i32_0 : i32
    scf.if %2 {
      %cst_10 = arith.constant 0.000000e+00 : f32
      %12 = vector.broadcast %cst_10 : f32 to vector<512x512xf32>
      %c0_11 = arith.constant 0 : index
      %c0_12 = arith.constant 0 : index
      %13 = vector.load %arg7[%c0_11, %c0_12] : memref<512x512xf32, #tpu.memory_space<vmem>>, vector<512x512xf32>
      tpu.vector_store %arg7[%c0_11, %c0_12], %12 {strides = array<i32>} : memref<512x512xf32, #tpu.memory_space<vmem>>, vector<512x512xf32>,
    } else {
    }
    %c0 = arith.constant 0 : index
    %c0_1 = arith.constant 0 : index
    %3 = vector.load %arg7[%c0, %c0_1] : memref<512x512xf32, #tpu.memory_space<vmem>>, vector<512x512xf32>
    %c0_2 = arith.constant 0 : index
    %c0_3 = arith.constant 0 : index
    %4 = vector.load %arg3[%c0_2, %c0_3] : memref<512x128xbf16, #tpu.memory_space<vmem>>, vector<512x128xbf16>
    %c0_4 = arith.constant 0 : index
    %c0_5 = arith.constant 0 : index
    %5 = vector.load %arg4[%c0_4, %c0_5] : memref<128x512xbf16, #tpu.memory_space<vmem>>, vector<128x512xbf16>
    %cst = arith.constant dense<0.000000e+00> : vector<512x512xf32>
    %6 = tpu.matmul %4, %5, %cst {dimension_numbers = #tpu.dot_dimension_numbers<[1], [0], [0], [1], [0, 0, 1, 1], [], []>} : vector<512x128xbf16>, vector<128x512xbf16>, vector<512x512xf32> -> vector<512x512xf32>
    %7 = arith.addf %3, %6 : vector<512x512xf32>
    %c0_6 = arith.constant 0 : index
    %c0_7 = arith.constant 0 : index
    %8 = vector.load %arg7[%c0_6, %c0_7] : memref<512x512xf32, #tpu.memory_space<vmem>>, vector<512x512xf32>
    tpu.vector_store %arg7[%c0_6, %c0_7], %7 {strides = array<i32>} : memref<512x512xf32, #tpu.memory_space<vmem>>, vector<512x512xf32>,
    %c0_i32_8 = arith.constant 0 : i32
    %9 = arith.cmpi eq, %arg2, %c0_i32_8 : i32
    %10 = arith.extui %9 : i1 to i32
    %c0_i32_9 = arith.constant 0 : i32
    %11 = arith.cmpi ne, %10, %c0_i32_9 : i32
    scf.if %11 {
      %c0_10 = arith.constant 0 : index
      %c0_11 = arith.constant 0 : index
      %12 = vector.load %arg7[%c0_10, %c0_11] : memref<512x512xf32, #tpu.memory_space<vmem>>, vector<512x512xf32>
      %c0_12 = arith.constant 0 : index
      %c0_13 = arith.constant 0 : index
      %13 = vector.load %arg5[%c0_12, %c0_13] : memref<1x512xf32, #tpu.memory_space<vmem>>, vector<1x512xf32>
      %14 = vector.broadcast %13 : vector<1x512xf32> to vector<512x512xf32>
      %15 = arith.addf %12, %14 : vector<512x512xf32>
      %16 = arith.truncf %15 : vector<512x512xf32> to vector<512x512xbf16>
      %c0_14 = arith.constant 0 : index
      %c0_15 = arith.constant 0 : index
      %17 = vector.load %arg6[%c0_14, %c0_15] : memref<512x512xbf16, #tpu.memory_space<vmem>>, vector<512x512xbf16>
      tpu.vector_store %arg6[%c0_14, %c0_15], %16 {strides = array<i32>} : memref<512x512xbf16, #tpu.memory_space<vmem>>, vector<512x512xbf16>,
    } else {
    }
    return
  }
  func.func @transform_0(%arg0: i32, %arg1: i32, %arg2: i32) -> (i32, i32) {
    %c0_i32 = arith.constant 0 : i32
    return %arg0, %arg2 : i32, i32
  }
  func.func @transform_1(%arg0: i32, %arg1: i32, %arg2: i32) -> (i32, i32) {
    %c0_i32 = arith.constant 0 : i32
    return %arg2, %arg1 : i32, i32
  }
  func.func @transform_2(%arg0: i32, %arg1: i32, %arg2: i32) -> (i32, i32) {
    %c0_i32 = arith.constant 0 : i32
    %c0_i32_0 = arith.constant 0 : i32
    return %c0_i32, %arg1 : i32, i32
  }
  func.func @transform_3(%arg0: i32, %arg1: i32, %arg2: i32) -> (i32, i32) {
    %c0_i32 = arith.constant 0 : i32
    return %arg0, %arg1 : i32, i32
  }
}

module attributes {stable_mosaic.version = 11 : i64} {
  func.func @_matmul_kernel(%arg0: i32, %arg1: i32, %arg2: i32, %arg3: memref<512x256xbf16, #tpu.memory_space<vmem>>, %arg4: memref<256x512xbf16, #tpu.memory_space<vmem>>, %arg5: memref<1x512xf32, #tpu.memory_space<vmem>>, %arg6: memref<512x512xbf16, #tpu.memory_space<vmem>>, %arg7: memref<512x512xf32, #tpu.memory_space<vmem>>) attributes {dimension_semantics = [#tpu.dimension_semantics<parallel>, #tpu.dimension_semantics<parallel>, #tpu.dimension_semantics<arbitrary>], iteration_bounds = array<i64: 4, 1, 1>, scalar_prefetch = 0 : i64, scratch_operands = 1 : i64, tpu.core_type = #tpu.core_type<tc>, window_params = [{transform_indices = @transform_0, window_bounds = array<i64: 512, 256>}, {transform_indices = @transform_1, window_bounds = array<i64: 256, 512>}, {transform_indices = @transform_2, window_bounds = array<i64: 1, 512>}, {transform_indices = @transform_3, window_bounds = array<i64: 512, 512>}]} {
    %c0_i32 = arith.constant 0 : i32
    %0 = arith.cmpi eq, %arg2, %c0_i32 : i32
    %1 = arith.extui %0 : i1 to i32
    %c0_i32_0 = arith.constant 0 : i32
    %2 = arith.cmpi ne, %1, %c0_i32_0 : i32
    scf.if %2 {
      %cst_10 = arith.constant 0.000000e+00 : f32
      %12 = vector.broadcast %cst_10 : f32 to vector<512x512xf32>
      %c0_11 = arith.constant 0 : index
      %c0_12 = arith.constant 0 : index
      %13 = vector.load %arg7[%c0_11, %c0_12] : memref<512x512xf32, #tpu.memory_space<vmem>>, vector<512x512xf32>
      tpu.vector_store %arg7[%c0_11, %c0_12], %12 {strides = array<i32>} : memref<512x512xf32, #tpu.memory_space<vmem>>, vector<512x512xf32>,
    } else {
    }
    %c0 = arith.constant 0 : index
    %c0_1 = arith.constant 0 : index
    %3 = vector.load %arg7[%c0, %c0_1] : memref<512x512xf32, #tpu.memory_space<vmem>>, vector<512x512xf32>
    %c0_2 = arith.constant 0 : index
    %c0_3 = arith.constant 0 : index
    %4 = vector.load %arg3[%c0_2, %c0_3] : memref<512x256xbf16, #tpu.memory_space<vmem>>, vector<512x256xbf16>
    %c0_4 = arith.constant 0 : index
    %c0_5 = arith.constant 0 : index
    %5 = vector.load %arg4[%c0_4, %c0_5] : memref<256x512xbf16, #tpu.memory_space<vmem>>, vector<256x512xbf16>
    %cst = arith.constant dense<0.000000e+00> : vector<512x512xf32>
    %6 = tpu.matmul %4, %5, %cst {dimension_numbers = #tpu.dot_dimension_numbers<[1], [0], [0], [1], [0, 0, 1, 1], [], []>} : vector<512x256xbf16>, vector<256x512xbf16>, vector<512x512xf32> -> vector<512x512xf32>
    %7 = arith.addf %3, %6 : vector<512x512xf32>
    %c0_6 = arith.constant 0 : index
    %c0_7 = arith.constant 0 : index
    %8 = vector.load %arg7[%c0_6, %c0_7] : memref<512x512xf32, #tpu.memory_space<vmem>>, vector<512x512xf32>
    tpu.vector_store %arg7[%c0_6, %c0_7], %7 {strides = array<i32>} : memref<512x512xf32, #tpu.memory_space<vmem>>, vector<512x512xf32>,
    %c0_i32_8 = arith.constant 0 : i32
    %9 = arith.cmpi eq, %arg2, %c0_i32_8 : i32
    %10 = arith.extui %9 : i1 to i32
    %c0_i32_9 = arith.constant 0 : i32
    %11 = arith.cmpi ne, %10, %c0_i32_9 : i32
    scf.if %11 {
      %c0_10 = arith.constant 0 : index
      %c0_11 = arith.constant 0 : index
      %12 = vector.load %arg7[%c0_10, %c0_11] : memref<512x512xf32, #tpu.memory_space<vmem>>, vector<512x512xf32>
      %c0_12 = arith.constant 0 : index
      %c0_13 = arith.constant 0 : index
      %13 = vector.load %arg5[%c0_12, %c0_13] : memref<1x512xf32, #tpu.memory_space<vmem>>, vector<1x512xf32>
      %14 = vector.broadcast %13 : vector<1x512xf32> to vector<512x512xf32>
      %15 = arith.addf %12, %14 : vector<512x512xf32>
      %16 = arith.truncf %15 : vector<512x512xf32> to vector<512x512xbf16>
      %c0_14 = arith.constant 0 : index
      %c0_15 = arith.constant 0 : index
      %17 = vector.load %arg6[%c0_14, %c0_15] : memref<512x512xbf16, #tpu.memory_space<vmem>>, vector<512x512xbf16>
      tpu.vector_store %arg6[%c0_14, %c0_15], %16 {strides = array<i32>} : memref<512x512xbf16, #tpu.memory_space<vmem>>, vector<512x512xbf16>,
    } else {
    }
    return
  }
  func.func @transform_0(%arg0: i32, %arg1: i32, %arg2: i32) -> (i32, i32) {
    %c0_i32 = arith.constant 0 : i32
    return %arg0, %arg2 : i32, i32
  }
  func.func @transform_1(%arg0: i32, %arg1: i32, %arg2: i32) -> (i32, i32) {
    %c0_i32 = arith.constant 0 : i32
    return %arg2, %arg1 : i32, i32
  }
  func.func @transform_2(%arg0: i32, %arg1: i32, %arg2: i32) -> (i32, i32) {
    %c0_i32 = arith.constant 0 : i32
    %c0_i32_0 = arith.constant 0 : i32
    return %c0_i32, %arg1 : i32, i32
  }
  func.func @transform_3(%arg0: i32, %arg1: i32, %arg2: i32) -> (i32, i32) {
    %c0_i32 = arith.constant 0 : i32
    return %arg0, %arg1 : i32, i32
  }
}

module attributes {stable_mosaic.version = 11 : i64} {
  func.func @_add_relu_kernel(%arg0: i32, %arg1: memref<512x512xbf16, #tpu.memory_space<vmem>>, %arg2: memref<512x512xbf16, #tpu.memory_space<vmem>>, %arg3: memref<512x512xbf16, #tpu.memory_space<vmem>>) attributes {dimension_semantics = [#tpu.dimension_semantics<arbitrary>], iteration_bounds = array<i64: 4>, scalar_prefetch = 0 : i64, scratch_operands = 0 : i64, tpu.core_type = #tpu.core_type<tc>, window_params = [{transform_indices = @transform_0, window_bounds = array<i64: 512, 512>}, {transform_indices = @transform_1, window_bounds = array<i64: 512, 512>}, {transform_indices = @transform_2, window_bounds = array<i64: 512, 512>}]} {
    %c0 = arith.constant 0 : index
    %c0_0 = arith.constant 0 : index
    %0 = vector.load %arg1[%c0, %c0_0] : memref<512x512xbf16, #tpu.memory_space<vmem>>, vector<512x512xbf16>
    %1 = arith.extf %0 : vector<512x512xbf16> to vector<512x512xf32>
    %c0_1 = arith.constant 0 : index
    %c0_2 = arith.constant 0 : index
    %2 = vector.load %arg2[%c0_1, %c0_2] : memref<512x512xbf16, #tpu.memory_space<vmem>>, vector<512x512xbf16>
    %3 = arith.extf %2 : vector<512x512xbf16> to vector<512x512xf32>
    %4 = arith.addf %1, %3 : vector<512x512xf32>
    %cst = arith.constant 0.000000e+00 : f32
    %5 = vector.broadcast %cst : f32 to vector<512x512xf32>
    %6 = arith.maximumf %4, %5 : vector<512x512xf32>
    %7 = arith.truncf %6 : vector<512x512xf32> to vector<512x512xbf16>
    %c0_3 = arith.constant 0 : index
    %c0_4 = arith.constant 0 : index
    %8 = vector.load %arg3[%c0_3, %c0_4] : memref<512x512xbf16, #tpu.memory_space<vmem>>, vector<512x512xbf16>
    tpu.vector_store %arg3[%c0_3, %c0_4], %7 {strides = array<i32>} : memref<512x512xbf16, #tpu.memory_space<vmem>>, vector<512x512xbf16>,
    return
  }
  func.func @transform_0(%arg0: i32) -> (i32, i32) {
    %c0_i32 = arith.constant 0 : i32
    %c0_i32_0 = arith.constant 0 : i32
    return %arg0, %c0_i32 : i32, i32
  }
  func.func @transform_1(%arg0: i32) -> (i32, i32) {
    %c0_i32 = arith.constant 0 : i32
    %c0_i32_0 = arith.constant 0 : i32
    return %arg0, %c0_i32 : i32, i32
  }
  func.func @transform_2(%arg0: i32) -> (i32, i32) {
    %c0_i32 = arith.constant 0 : i32
    %c0_i32_0 = arith.constant 0 : i32
    return %arg0, %c0_i32 : i32, i32
  }
}

module attributes {stable_mosaic.version = 11 : i64} {
  func.func @_matmul_kernel(%arg0: i32, %arg1: i32, %arg2: i32, %arg3: memref<512x512xbf16, #tpu.memory_space<vmem>>, %arg4: memref<512x128xbf16, #tpu.memory_space<vmem>>, %arg5: memref<1x128xf32, #tpu.memory_space<vmem>>, %arg6: memref<512x128xbf16, #tpu.memory_space<vmem>>, %arg7: memref<512x128xf32, #tpu.memory_space<vmem>>) attributes {dimension_semantics = [#tpu.dimension_semantics<parallel>, #tpu.dimension_semantics<parallel>, #tpu.dimension_semantics<arbitrary>], iteration_bounds = array<i64: 4, 1, 1>, scalar_prefetch = 0 : i64, scratch_operands = 1 : i64, tpu.core_type = #tpu.core_type<tc>, window_params = [{transform_indices = @transform_0, window_bounds = array<i64: 512, 512>}, {transform_indices = @transform_1, window_bounds = array<i64: 512, 128>}, {transform_indices = @transform_2, window_bounds = array<i64: 1, 128>}, {transform_indices = @transform_3, window_bounds = array<i64: 512, 128>}]} {
    %c0_i32 = arith.constant 0 : i32
    %0 = arith.cmpi eq, %arg2, %c0_i32 : i32
    %1 = arith.extui %0 : i1 to i32
    %c0_i32_0 = arith.constant 0 : i32
    %2 = arith.cmpi ne, %1, %c0_i32_0 : i32
    scf.if %2 {
      %cst_10 = arith.constant 0.000000e+00 : f32
      %12 = vector.broadcast %cst_10 : f32 to vector<512x128xf32>
      %c0_11 = arith.constant 0 : index
      %c0_12 = arith.constant 0 : index
      %13 = vector.load %arg7[%c0_11, %c0_12] : memref<512x128xf32, #tpu.memory_space<vmem>>, vector<512x128xf32>
      tpu.vector_store %arg7[%c0_11, %c0_12], %12 {strides = array<i32>} : memref<512x128xf32, #tpu.memory_space<vmem>>, vector<512x128xf32>,
    } else {
    }
    %c0 = arith.constant 0 : index
    %c0_1 = arith.constant 0 : index
    %3 = vector.load %arg7[%c0, %c0_1] : memref<512x128xf32, #tpu.memory_space<vmem>>, vector<512x128xf32>
    %c0_2 = arith.constant 0 : index
    %c0_3 = arith.constant 0 : index
    %4 = vector.load %arg3[%c0_2, %c0_3] : memref<512x512xbf16, #tpu.memory_space<vmem>>, vector<512x512xbf16>
    %c0_4 = arith.constant 0 : index
    %c0_5 = arith.constant 0 : index
    %5 = vector.load %arg4[%c0_4, %c0_5] : memref<512x128xbf16, #tpu.memory_space<vmem>>, vector<512x128xbf16>
    %cst = arith.constant dense<0.000000e+00> : vector<512x128xf32>
    %6 = tpu.matmul %4, %5, %cst {dimension_numbers = #tpu.dot_dimension_numbers<[1], [0], [0], [1], [0, 0, 1, 1], [], []>} : vector<512x512xbf16>, vector<512x128xbf16>, vector<512x128xf32> -> vector<512x128xf32>
    %7 = arith.addf %3, %6 : vector<512x128xf32>
    %c0_6 = arith.constant 0 : index
    %c0_7 = arith.constant 0 : index
    %8 = vector.load %arg7[%c0_6, %c0_7] : memref<512x128xf32, #tpu.memory_space<vmem>>, vector<512x128xf32>
    tpu.vector_store %arg7[%c0_6, %c0_7], %7 {strides = array<i32>} : memref<512x128xf32, #tpu.memory_space<vmem>>, vector<512x128xf32>,
    %c0_i32_8 = arith.constant 0 : i32
    %9 = arith.cmpi eq, %arg2, %c0_i32_8 : i32
    %10 = arith.extui %9 : i1 to i32
    %c0_i32_9 = arith.constant 0 : i32
    %11 = arith.cmpi ne, %10, %c0_i32_9 : i32
    scf.if %11 {
      %c0_10 = arith.constant 0 : index
      %c0_11 = arith.constant 0 : index
      %12 = vector.load %arg7[%c0_10, %c0_11] : memref<512x128xf32, #tpu.memory_space<vmem>>, vector<512x128xf32>
      %c0_12 = arith.constant 0 : index
      %c0_13 = arith.constant 0 : index
      %13 = vector.load %arg5[%c0_12, %c0_13] : memref<1x128xf32, #tpu.memory_space<vmem>>, vector<1x128xf32>
      %14 = vector.broadcast %13 : vector<1x128xf32> to vector<512x128xf32>
      %15 = arith.addf %12, %14 : vector<512x128xf32>
      %cst_14 = arith.constant 0.000000e+00 : f32
      %16 = vector.broadcast %cst_14 : f32 to vector<512x128xf32>
      %17 = arith.maximumf %15, %16 : vector<512x128xf32>
      %18 = arith.truncf %17 : vector<512x128xf32> to vector<512x128xbf16>
      %c0_15 = arith.constant 0 : index
      %c0_16 = arith.constant 0 : index
      %19 = vector.load %arg6[%c0_15, %c0_16] : memref<512x128xbf16, #tpu.memory_space<vmem>>, vector<512x128xbf16>
      tpu.vector_store %arg6[%c0_15, %c0_16], %18 {strides = array<i32>} : memref<512x128xbf16, #tpu.memory_space<vmem>>, vector<512x128xbf16>,
    } else {
    }
    return
  }
  func.func @transform_0(%arg0: i32, %arg1: i32, %arg2: i32) -> (i32, i32) {
    %c0_i32 = arith.constant 0 : i32
    return %arg0, %arg2 : i32, i32
  }
  func.func @transform_1(%arg0: i32, %arg1: i32, %arg2: i32) -> (i32, i32) {
    %c0_i32 = arith.constant 0 : i32
    return %arg2, %arg1 : i32, i32
  }
  func.func @transform_2(%arg0: i32, %arg1: i32, %arg2: i32) -> (i32, i32) {
    %c0_i32 = arith.constant 0 : i32
    %c0_i32_0 = arith.constant 0 : i32
    return %c0_i32, %arg1 : i32, i32
  }
  func.func @transform_3(%arg0: i32, %arg1: i32, %arg2: i32) -> (i32, i32) {
    %c0_i32 = arith.constant 0 : i32
    return %arg0, %arg1 : i32, i32
  }
}

module attributes {stable_mosaic.version = 11 : i64} {
  func.func @_matmul_kernel(%arg0: i32, %arg1: i32, %arg2: i32, %arg3: memref<512x512xbf16, #tpu.memory_space<vmem>>, %arg4: memref<512x256xbf16, #tpu.memory_space<vmem>>, %arg5: memref<1x256xf32, #tpu.memory_space<vmem>>, %arg6: memref<512x256xbf16, #tpu.memory_space<vmem>>, %arg7: memref<512x256xf32, #tpu.memory_space<vmem>>) attributes {dimension_semantics = [#tpu.dimension_semantics<parallel>, #tpu.dimension_semantics<parallel>, #tpu.dimension_semantics<arbitrary>], iteration_bounds = array<i64: 4, 1, 1>, scalar_prefetch = 0 : i64, scratch_operands = 1 : i64, tpu.core_type = #tpu.core_type<tc>, window_params = [{transform_indices = @transform_0, window_bounds = array<i64: 512, 512>}, {transform_indices = @transform_1, window_bounds = array<i64: 512, 256>}, {transform_indices = @transform_2, window_bounds = array<i64: 1, 256>}, {transform_indices = @transform_3, window_bounds = array<i64: 512, 256>}]} {
    %c0_i32 = arith.constant 0 : i32
    %0 = arith.cmpi eq, %arg2, %c0_i32 : i32
    %1 = arith.extui %0 : i1 to i32
    %c0_i32_0 = arith.constant 0 : i32
    %2 = arith.cmpi ne, %1, %c0_i32_0 : i32
    scf.if %2 {
      %cst_10 = arith.constant 0.000000e+00 : f32
      %12 = vector.broadcast %cst_10 : f32 to vector<512x256xf32>
      %c0_11 = arith.constant 0 : index
      %c0_12 = arith.constant 0 : index
      %13 = vector.load %arg7[%c0_11, %c0_12] : memref<512x256xf32, #tpu.memory_space<vmem>>, vector<512x256xf32>
      tpu.vector_store %arg7[%c0_11, %c0_12], %12 {strides = array<i32>} : memref<512x256xf32, #tpu.memory_space<vmem>>, vector<512x256xf32>,
    } else {
    }
    %c0 = arith.constant 0 : index
    %c0_1 = arith.constant 0 : index
    %3 = vector.load %arg7[%c0, %c0_1] : memref<512x256xf32, #tpu.memory_space<vmem>>, vector<512x256xf32>
    %c0_2 = arith.constant 0 : index
    %c0_3 = arith.constant 0 : index
    %4 = vector.load %arg3[%c0_2, %c0_3] : memref<512x512xbf16, #tpu.memory_space<vmem>>, vector<512x512xbf16>
    %c0_4 = arith.constant 0 : index
    %c0_5 = arith.constant 0 : index
    %5 = vector.load %arg4[%c0_4, %c0_5] : memref<512x256xbf16, #tpu.memory_space<vmem>>, vector<512x256xbf16>
    %cst = arith.constant dense<0.000000e+00> : vector<512x256xf32>
    %6 = tpu.matmul %4, %5, %cst {dimension_numbers = #tpu.dot_dimension_numbers<[1], [0], [0], [1], [0, 0, 1, 1], [], []>} : vector<512x512xbf16>, vector<512x256xbf16>, vector<512x256xf32> -> vector<512x256xf32>
    %7 = arith.addf %3, %6 : vector<512x256xf32>
    %c0_6 = arith.constant 0 : index
    %c0_7 = arith.constant 0 : index
    %8 = vector.load %arg7[%c0_6, %c0_7] : memref<512x256xf32, #tpu.memory_space<vmem>>, vector<512x256xf32>
    tpu.vector_store %arg7[%c0_6, %c0_7], %7 {strides = array<i32>} : memref<512x256xf32, #tpu.memory_space<vmem>>, vector<512x256xf32>,
    %c0_i32_8 = arith.constant 0 : i32
    %9 = arith.cmpi eq, %arg2, %c0_i32_8 : i32
    %10 = arith.extui %9 : i1 to i32
    %c0_i32_9 = arith.constant 0 : i32
    %11 = arith.cmpi ne, %10, %c0_i32_9 : i32
    scf.if %11 {
      %c0_10 = arith.constant 0 : index
      %c0_11 = arith.constant 0 : index
      %12 = vector.load %arg7[%c0_10, %c0_11] : memref<512x256xf32, #tpu.memory_space<vmem>>, vector<512x256xf32>
      %c0_12 = arith.constant 0 : index
      %c0_13 = arith.constant 0 : index
      %13 = vector.load %arg5[%c0_12, %c0_13] : memref<1x256xf32, #tpu.memory_space<vmem>>, vector<1x256xf32>
      %14 = vector.broadcast %13 : vector<1x256xf32> to vector<512x256xf32>
      %15 = arith.addf %12, %14 : vector<512x256xf32>
      %cst_14 = arith.constant 0.000000e+00 : f32
      %16 = vector.broadcast %cst_14 : f32 to vector<512x256xf32>
      %17 = arith.maximumf %15, %16 : vector<512x256xf32>
      %18 = arith.truncf %17 : vector<512x256xf32> to vector<512x256xbf16>
      %c0_15 = arith.constant 0 : index
      %c0_16 = arith.constant 0 : index
      %19 = vector.load %arg6[%c0_15, %c0_16] : memref<512x256xbf16, #tpu.memory_space<vmem>>, vector<512x256xbf16>
      tpu.vector_store %arg6[%c0_15, %c0_16], %18 {strides = array<i32>} : memref<512x256xbf16, #tpu.memory_space<vmem>>, vector<512x256xbf16>,
    } else {
    }
    return
  }
  func.func @transform_0(%arg0: i32, %arg1: i32, %arg2: i32) -> (i32, i32) {
    %c0_i32 = arith.constant 0 : i32
    return %arg0, %arg2 : i32, i32
  }
  func.func @transform_1(%arg0: i32, %arg1: i32, %arg2: i32) -> (i32, i32) {
    %c0_i32 = arith.constant 0 : i32
    return %arg2, %arg1 : i32, i32
  }
  func.func @transform_2(%arg0: i32, %arg1: i32, %arg2: i32) -> (i32, i32) {
    %c0_i32 = arith.constant 0 : i32
    %c0_i32_0 = arith.constant 0 : i32
    return %c0_i32, %arg1 : i32, i32
  }
  func.func @transform_3(%arg0: i32, %arg1: i32, %arg2: i32) -> (i32, i32) {
    %c0_i32 = arith.constant 0 : i32
    return %arg0, %arg1 : i32, i32
  }
}

module attributes {stable_mosaic.version = 11 : i64} {
  func.func @_matmul_kernel(%arg0: i32, %arg1: i32, %arg2: i32, %arg3: memref<512x384xbf16, #tpu.memory_space<vmem>>, %arg4: memref<384x256xbf16, #tpu.memory_space<vmem>>, %arg5: memref<1x256xf32, #tpu.memory_space<vmem>>, %arg6: memref<512x256xbf16, #tpu.memory_space<vmem>>, %arg7: memref<512x256xf32, #tpu.memory_space<vmem>>) attributes {dimension_semantics = [#tpu.dimension_semantics<parallel>, #tpu.dimension_semantics<parallel>, #tpu.dimension_semantics<arbitrary>], iteration_bounds = array<i64: 1, 1, 6>, scalar_prefetch = 0 : i64, scratch_operands = 1 : i64, tpu.core_type = #tpu.core_type<tc>, window_params = [{transform_indices = @transform_0, window_bounds = array<i64: 512, 384>}, {transform_indices = @transform_1, window_bounds = array<i64: 384, 256>}, {transform_indices = @transform_2, window_bounds = array<i64: 1, 256>}, {transform_indices = @transform_3, window_bounds = array<i64: 512, 256>}]} {
    %c0_i32 = arith.constant 0 : i32
    %0 = arith.cmpi eq, %arg2, %c0_i32 : i32
    %1 = arith.extui %0 : i1 to i32
    %c0_i32_0 = arith.constant 0 : i32
    %2 = arith.cmpi ne, %1, %c0_i32_0 : i32
    scf.if %2 {
      %cst_9 = arith.constant 0.000000e+00 : f32
      %12 = vector.broadcast %cst_9 : f32 to vector<512x256xf32>
      %c0_10 = arith.constant 0 : index
      %c0_11 = arith.constant 0 : index
      %13 = vector.load %arg7[%c0_10, %c0_11] : memref<512x256xf32, #tpu.memory_space<vmem>>, vector<512x256xf32>
      tpu.vector_store %arg7[%c0_10, %c0_11], %12 {strides = array<i32>} : memref<512x256xf32, #tpu.memory_space<vmem>>, vector<512x256xf32>,
    } else {
    }
    %c0 = arith.constant 0 : index
    %c0_1 = arith.constant 0 : index
    %3 = vector.load %arg7[%c0, %c0_1] : memref<512x256xf32, #tpu.memory_space<vmem>>, vector<512x256xf32>
    %c0_2 = arith.constant 0 : index
    %c0_3 = arith.constant 0 : index
    %4 = vector.load %arg3[%c0_2, %c0_3] : memref<512x384xbf16, #tpu.memory_space<vmem>>, vector<512x384xbf16>
    %c0_4 = arith.constant 0 : index
    %c0_5 = arith.constant 0 : index
    %5 = vector.load %arg4[%c0_4, %c0_5] : memref<384x256xbf16, #tpu.memory_space<vmem>>, vector<384x256xbf16>
    %cst = arith.constant dense<0.000000e+00> : vector<512x256xf32>
    %6 = tpu.matmul %4, %5, %cst {dimension_numbers = #tpu.dot_dimension_numbers<[1], [0], [0], [1], [0, 0, 1, 1], [], []>} : vector<512x384xbf16>, vector<384x256xbf16>, vector<512x256xf32> -> vector<512x256xf32>
    %7 = arith.addf %3, %6 : vector<512x256xf32>
    %c0_6 = arith.constant 0 : index
    %c0_7 = arith.constant 0 : index
    %8 = vector.load %arg7[%c0_6, %c0_7] : memref<512x256xf32, #tpu.memory_space<vmem>>, vector<512x256xf32>
    tpu.vector_store %arg7[%c0_6, %c0_7], %7 {strides = array<i32>} : memref<512x256xf32, #tpu.memory_space<vmem>>, vector<512x256xf32>,
    %c5_i32 = arith.constant 5 : i32
    %9 = arith.cmpi eq, %arg2, %c5_i32 : i32
    %10 = arith.extui %9 : i1 to i32
    %c0_i32_8 = arith.constant 0 : i32
    %11 = arith.cmpi ne, %10, %c0_i32_8 : i32
    scf.if %11 {
      %c0_9 = arith.constant 0 : index
      %c0_10 = arith.constant 0 : index
      %12 = vector.load %arg7[%c0_9, %c0_10] : memref<512x256xf32, #tpu.memory_space<vmem>>, vector<512x256xf32>
      %c0_11 = arith.constant 0 : index
      %c0_12 = arith.constant 0 : index
      %13 = vector.load %arg5[%c0_11, %c0_12] : memref<1x256xf32, #tpu.memory_space<vmem>>, vector<1x256xf32>
      %14 = vector.broadcast %13 : vector<1x256xf32> to vector<512x256xf32>
      %15 = arith.addf %12, %14 : vector<512x256xf32>
      %cst_13 = arith.constant 0.000000e+00 : f32
      %16 = vector.broadcast %cst_13 : f32 to vector<512x256xf32>
      %17 = arith.maximumf %15, %16 : vector<512x256xf32>
      %18 = arith.truncf %17 : vector<512x256xf32> to vector<512x256xbf16>
      %c0_14 = arith.constant 0 : index
      %c0_15 = arith.constant 0 : index
      %19 = vector.load %arg6[%c0_14, %c0_15] : memref<512x256xbf16, #tpu.memory_space<vmem>>, vector<512x256xbf16>
      tpu.vector_store %arg6[%c0_14, %c0_15], %18 {strides = array<i32>} : memref<512x256xbf16, #tpu.memory_space<vmem>>, vector<512x256xbf16>,
    } else {
    }
    return
  }
  func.func @transform_0(%arg0: i32, %arg1: i32, %arg2: i32) -> (i32, i32) {
    %c0_i32 = arith.constant 0 : i32
    return %arg0, %arg2 : i32, i32
  }
  func.func @transform_1(%arg0: i32, %arg1: i32, %arg2: i32) -> (i32, i32) {
    %c0_i32 = arith.constant 0 : i32
    return %arg2, %arg1 : i32, i32
  }
  func.func @transform_2(%arg0: i32, %arg1: i32, %arg2: i32) -> (i32, i32) {
    %c0_i32 = arith.constant 0 : i32
    %c0_i32_0 = arith.constant 0 : i32
    return %c0_i32, %arg1 : i32, i32
  }
  func.func @transform_3(%arg0: i32, %arg1: i32, %arg2: i32) -> (i32, i32) {
    %c0_i32 = arith.constant 0 : i32
    return %arg0, %arg1 : i32, i32
  }
}

module attributes {stable_mosaic.version = 11 : i64} {
  func.func @_matmul_kernel(%arg0: i32, %arg1: i32, %arg2: i32, %arg3: memref<512x256xbf16, #tpu.memory_space<vmem>>, %arg4: memref<256x512xbf16, #tpu.memory_space<vmem>>, %arg5: memref<1x512xf32, #tpu.memory_space<vmem>>, %arg6: memref<512x512xbf16, #tpu.memory_space<vmem>>, %arg7: memref<512x512xf32, #tpu.memory_space<vmem>>) attributes {dimension_semantics = [#tpu.dimension_semantics<parallel>, #tpu.dimension_semantics<parallel>, #tpu.dimension_semantics<arbitrary>], iteration_bounds = array<i64: 1, 2, 1>, scalar_prefetch = 0 : i64, scratch_operands = 1 : i64, tpu.core_type = #tpu.core_type<tc>, window_params = [{transform_indices = @transform_0, window_bounds = array<i64: 512, 256>}, {transform_indices = @transform_1, window_bounds = array<i64: 256, 512>}, {transform_indices = @transform_2, window_bounds = array<i64: 1, 512>}, {transform_indices = @transform_3, window_bounds = array<i64: 512, 512>}]} {
    %c0_i32 = arith.constant 0 : i32
    %0 = arith.cmpi eq, %arg2, %c0_i32 : i32
    %1 = arith.extui %0 : i1 to i32
    %c0_i32_0 = arith.constant 0 : i32
    %2 = arith.cmpi ne, %1, %c0_i32_0 : i32
    scf.if %2 {
      %cst_10 = arith.constant 0.000000e+00 : f32
      %12 = vector.broadcast %cst_10 : f32 to vector<512x512xf32>
      %c0_11 = arith.constant 0 : index
      %c0_12 = arith.constant 0 : index
      %13 = vector.load %arg7[%c0_11, %c0_12] : memref<512x512xf32, #tpu.memory_space<vmem>>, vector<512x512xf32>
      tpu.vector_store %arg7[%c0_11, %c0_12], %12 {strides = array<i32>} : memref<512x512xf32, #tpu.memory_space<vmem>>, vector<512x512xf32>,
    } else {
    }
    %c0 = arith.constant 0 : index
    %c0_1 = arith.constant 0 : index
    %3 = vector.load %arg7[%c0, %c0_1] : memref<512x512xf32, #tpu.memory_space<vmem>>, vector<512x512xf32>
    %c0_2 = arith.constant 0 : index
    %c0_3 = arith.constant 0 : index
    %4 = vector.load %arg3[%c0_2, %c0_3] : memref<512x256xbf16, #tpu.memory_space<vmem>>, vector<512x256xbf16>
    %c0_4 = arith.constant 0 : index
    %c0_5 = arith.constant 0 : index
    %5 = vector.load %arg4[%c0_4, %c0_5] : memref<256x512xbf16, #tpu.memory_space<vmem>>, vector<256x512xbf16>
    %cst = arith.constant dense<0.000000e+00> : vector<512x512xf32>
    %6 = tpu.matmul %4, %5, %cst {dimension_numbers = #tpu.dot_dimension_numbers<[1], [0], [0], [1], [0, 0, 1, 1], [], []>} : vector<512x256xbf16>, vector<256x512xbf16>, vector<512x512xf32> -> vector<512x512xf32>
    %7 = arith.addf %3, %6 : vector<512x512xf32>
    %c0_6 = arith.constant 0 : index
    %c0_7 = arith.constant 0 : index
    %8 = vector.load %arg7[%c0_6, %c0_7] : memref<512x512xf32, #tpu.memory_space<vmem>>, vector<512x512xf32>
    tpu.vector_store %arg7[%c0_6, %c0_7], %7 {strides = array<i32>} : memref<512x512xf32, #tpu.memory_space<vmem>>, vector<512x512xf32>,
    %c0_i32_8 = arith.constant 0 : i32
    %9 = arith.cmpi eq, %arg2, %c0_i32_8 : i32
    %10 = arith.extui %9 : i1 to i32
    %c0_i32_9 = arith.constant 0 : i32
    %11 = arith.cmpi ne, %10, %c0_i32_9 : i32
    scf.if %11 {
      %c0_10 = arith.constant 0 : index
      %c0_11 = arith.constant 0 : index
      %12 = vector.load %arg7[%c0_10, %c0_11] : memref<512x512xf32, #tpu.memory_space<vmem>>, vector<512x512xf32>
      %c0_12 = arith.constant 0 : index
      %c0_13 = arith.constant 0 : index
      %13 = vector.load %arg5[%c0_12, %c0_13] : memref<1x512xf32, #tpu.memory_space<vmem>>, vector<1x512xf32>
      %14 = vector.broadcast %13 : vector<1x512xf32> to vector<512x512xf32>
      %15 = arith.addf %12, %14 : vector<512x512xf32>
      %16 = arith.truncf %15 : vector<512x512xf32> to vector<512x512xbf16>
      %c0_14 = arith.constant 0 : index
      %c0_15 = arith.constant 0 : index
      %17 = vector.load %arg6[%c0_14, %c0_15] : memref<512x512xbf16, #tpu.memory_space<vmem>>, vector<512x512xbf16>
      tpu.vector_store %arg6[%c0_14, %c0_15], %16 {strides = array<i32>} : memref<512x512xbf16, #tpu.memory_space<vmem>>, vector<512x512xbf16>,
    } else {
    }
    return
  }
  func.func @transform_0(%arg0: i32, %arg1: i32, %arg2: i32) -> (i32, i32) {
    %c0_i32 = arith.constant 0 : i32
    return %arg0, %arg2 : i32, i32
  }
  func.func @transform_1(%arg0: i32, %arg1: i32, %arg2: i32) -> (i32, i32) {
    %c0_i32 = arith.constant 0 : i32
    return %arg2, %arg1 : i32, i32
  }
  func.func @transform_2(%arg0: i32, %arg1: i32, %arg2: i32) -> (i32, i32) {
    %c0_i32 = arith.constant 0 : i32
    %c0_i32_0 = arith.constant 0 : i32
    return %c0_i32, %arg1 : i32, i32
  }
  func.func @transform_3(%arg0: i32, %arg1: i32, %arg2: i32) -> (i32, i32) {
    %c0_i32 = arith.constant 0 : i32
    return %arg0, %arg1 : i32, i32
  }
}

module attributes {stable_mosaic.version = 11 : i64} {
  func.func @_matmul_kernel(%arg0: i32, %arg1: i32, %arg2: i32, %arg3: memref<512x512xbf16, #tpu.memory_space<vmem>>, %arg4: memref<512x512xbf16, #tpu.memory_space<vmem>>, %arg5: memref<1x512xf32, #tpu.memory_space<vmem>>, %arg6: memref<512x512xbf16, #tpu.memory_space<vmem>>, %arg7: memref<512x512xf32, #tpu.memory_space<vmem>>) attributes {dimension_semantics = [#tpu.dimension_semantics<parallel>, #tpu.dimension_semantics<parallel>, #tpu.dimension_semantics<arbitrary>], iteration_bounds = array<i64: 1, 2, 1>, scalar_prefetch = 0 : i64, scratch_operands = 1 : i64, tpu.core_type = #tpu.core_type<tc>, window_params = [{transform_indices = @transform_0, window_bounds = array<i64: 512, 512>}, {transform_indices = @transform_1, window_bounds = array<i64: 512, 512>}, {transform_indices = @transform_2, window_bounds = array<i64: 1, 512>}, {transform_indices = @transform_3, window_bounds = array<i64: 512, 512>}]} {
    %c0_i32 = arith.constant 0 : i32
    %0 = arith.cmpi eq, %arg2, %c0_i32 : i32
    %1 = arith.extui %0 : i1 to i32
    %c0_i32_0 = arith.constant 0 : i32
    %2 = arith.cmpi ne, %1, %c0_i32_0 : i32
    scf.if %2 {
      %cst_10 = arith.constant 0.000000e+00 : f32
      %12 = vector.broadcast %cst_10 : f32 to vector<512x512xf32>
      %c0_11 = arith.constant 0 : index
      %c0_12 = arith.constant 0 : index
      %13 = vector.load %arg7[%c0_11, %c0_12] : memref<512x512xf32, #tpu.memory_space<vmem>>, vector<512x512xf32>
      tpu.vector_store %arg7[%c0_11, %c0_12], %12 {strides = array<i32>} : memref<512x512xf32, #tpu.memory_space<vmem>>, vector<512x512xf32>,
    } else {
    }
    %c0 = arith.constant 0 : index
    %c0_1 = arith.constant 0 : index
    %3 = vector.load %arg7[%c0, %c0_1] : memref<512x512xf32, #tpu.memory_space<vmem>>, vector<512x512xf32>
    %c0_2 = arith.constant 0 : index
    %c0_3 = arith.constant 0 : index
    %4 = vector.load %arg3[%c0_2, %c0_3] : memref<512x512xbf16, #tpu.memory_space<vmem>>, vector<512x512xbf16>
    %c0_4 = arith.constant 0 : index
    %c0_5 = arith.constant 0 : index
    %5 = vector.load %arg4[%c0_4, %c0_5] : memref<512x512xbf16, #tpu.memory_space<vmem>>, vector<512x512xbf16>
    %cst = arith.constant dense<0.000000e+00> : vector<512x512xf32>
    %6 = tpu.matmul %4, %5, %cst {dimension_numbers = #tpu.dot_dimension_numbers<[1], [0], [0], [1], [0, 0, 1, 1], [], []>} : vector<512x512xbf16>, vector<512x512xbf16>, vector<512x512xf32> -> vector<512x512xf32>
    %7 = arith.addf %3, %6 : vector<512x512xf32>
    %c0_6 = arith.constant 0 : index
    %c0_7 = arith.constant 0 : index
    %8 = vector.load %arg7[%c0_6, %c0_7] : memref<512x512xf32, #tpu.memory_space<vmem>>, vector<512x512xf32>
    tpu.vector_store %arg7[%c0_6, %c0_7], %7 {strides = array<i32>} : memref<512x512xf32, #tpu.memory_space<vmem>>, vector<512x512xf32>,
    %c0_i32_8 = arith.constant 0 : i32
    %9 = arith.cmpi eq, %arg2, %c0_i32_8 : i32
    %10 = arith.extui %9 : i1 to i32
    %c0_i32_9 = arith.constant 0 : i32
    %11 = arith.cmpi ne, %10, %c0_i32_9 : i32
    scf.if %11 {
      %c0_10 = arith.constant 0 : index
      %c0_11 = arith.constant 0 : index
      %12 = vector.load %arg7[%c0_10, %c0_11] : memref<512x512xf32, #tpu.memory_space<vmem>>, vector<512x512xf32>
      %c0_12 = arith.constant 0 : index
      %c0_13 = arith.constant 0 : index
      %13 = vector.load %arg5[%c0_12, %c0_13] : memref<1x512xf32, #tpu.memory_space<vmem>>, vector<1x512xf32>
      %14 = vector.broadcast %13 : vector<1x512xf32> to vector<512x512xf32>
      %15 = arith.addf %12, %14 : vector<512x512xf32>
      %16 = arith.truncf %15 : vector<512x512xf32> to vector<512x512xbf16>
      %c0_14 = arith.constant 0 : index
      %c0_15 = arith.constant 0 : index
      %17 = vector.load %arg6[%c0_14, %c0_15] : memref<512x512xbf16, #tpu.memory_space<vmem>>, vector<512x512xbf16>
      tpu.vector_store %arg6[%c0_14, %c0_15], %16 {strides = array<i32>} : memref<512x512xbf16, #tpu.memory_space<vmem>>, vector<512x512xbf16>,
    } else {
    }
    return
  }
  func.func @transform_0(%arg0: i32, %arg1: i32, %arg2: i32) -> (i32, i32) {
    %c0_i32 = arith.constant 0 : i32
    return %arg0, %arg2 : i32, i32
  }
  func.func @transform_1(%arg0: i32, %arg1: i32, %arg2: i32) -> (i32, i32) {
    %c0_i32 = arith.constant 0 : i32
    return %arg2, %arg1 : i32, i32
  }
  func.func @transform_2(%arg0: i32, %arg1: i32, %arg2: i32) -> (i32, i32) {
    %c0_i32 = arith.constant 0 : i32
    %c0_i32_0 = arith.constant 0 : i32
    return %c0_i32, %arg1 : i32, i32
  }
  func.func @transform_3(%arg0: i32, %arg1: i32, %arg2: i32) -> (i32, i32) {
    %c0_i32 = arith.constant 0 : i32
    return %arg0, %arg1 : i32, i32
  }
}

module attributes {stable_mosaic.version = 11 : i64} {
  func.func @_add_relu_kernel(%arg0: i32, %arg1: memref<512x1024xbf16, #tpu.memory_space<vmem>>, %arg2: memref<512x1024xbf16, #tpu.memory_space<vmem>>, %arg3: memref<512x1024xbf16, #tpu.memory_space<vmem>>) attributes {dimension_semantics = [#tpu.dimension_semantics<arbitrary>], iteration_bounds = array<i64: 1>, scalar_prefetch = 0 : i64, scratch_operands = 0 : i64, tpu.core_type = #tpu.core_type<tc>, window_params = [{transform_indices = @transform_0, window_bounds = array<i64: 512, 1024>}, {transform_indices = @transform_1, window_bounds = array<i64: 512, 1024>}, {transform_indices = @transform_2, window_bounds = array<i64: 512, 1024>}]} {
    %c0 = arith.constant 0 : index
    %c0_0 = arith.constant 0 : index
    %0 = vector.load %arg1[%c0, %c0_0] : memref<512x1024xbf16, #tpu.memory_space<vmem>>, vector<512x1024xbf16>
    %1 = arith.extf %0 : vector<512x1024xbf16> to vector<512x1024xf32>
    %c0_1 = arith.constant 0 : index
    %c0_2 = arith.constant 0 : index
    %2 = vector.load %arg2[%c0_1, %c0_2] : memref<512x1024xbf16, #tpu.memory_space<vmem>>, vector<512x1024xbf16>
    %3 = arith.extf %2 : vector<512x1024xbf16> to vector<512x1024xf32>
    %4 = arith.addf %1, %3 : vector<512x1024xf32>
    %cst = arith.constant 0.000000e+00 : f32
    %5 = vector.broadcast %cst : f32 to vector<512x1024xf32>
    %6 = arith.maximumf %4, %5 : vector<512x1024xf32>
    %7 = arith.truncf %6 : vector<512x1024xf32> to vector<512x1024xbf16>
    %c0_3 = arith.constant 0 : index
    %c0_4 = arith.constant 0 : index
    %8 = vector.load %arg3[%c0_3, %c0_4] : memref<512x1024xbf16, #tpu.memory_space<vmem>>, vector<512x1024xbf16>
    tpu.vector_store %arg3[%c0_3, %c0_4], %7 {strides = array<i32>} : memref<512x1024xbf16, #tpu.memory_space<vmem>>, vector<512x1024xbf16>,
    return
  }
  func.func @transform_0(%arg0: i32) -> (i32, i32) {
    %c0_i32 = arith.constant 0 : i32
    %c0_i32_0 = arith.constant 0 : i32
    return %arg0, %c0_i32 : i32, i32
  }
  func.func @transform_1(%arg0: i32) -> (i32, i32) {
    %c0_i32 = arith.constant 0 : i32
    %c0_i32_0 = arith.constant 0 : i32
    return %arg0, %c0_i32 : i32, i32
  }
  func.func @transform_2(%arg0: i32) -> (i32, i32) {
    %c0_i32 = arith.constant 0 : i32
    %c0_i32_0 = arith.constant 0 : i32
    return %arg0, %c0_i32 : i32, i32
  }
}

module attributes {stable_mosaic.version = 11 : i64} {
  func.func @_matmul_kernel(%arg0: i32, %arg1: i32, %arg2: i32, %arg3: memref<512x1024xbf16, #tpu.memory_space<vmem>>, %arg4: memref<1024x256xbf16, #tpu.memory_space<vmem>>, %arg5: memref<1x256xf32, #tpu.memory_space<vmem>>, %arg6: memref<512x256xbf16, #tpu.memory_space<vmem>>, %arg7: memref<512x256xf32, #tpu.memory_space<vmem>>) attributes {dimension_semantics = [#tpu.dimension_semantics<parallel>, #tpu.dimension_semantics<parallel>, #tpu.dimension_semantics<arbitrary>], iteration_bounds = array<i64: 1, 1, 1>, scalar_prefetch = 0 : i64, scratch_operands = 1 : i64, tpu.core_type = #tpu.core_type<tc>, window_params = [{transform_indices = @transform_0, window_bounds = array<i64: 512, 1024>}, {transform_indices = @transform_1, window_bounds = array<i64: 1024, 256>}, {transform_indices = @transform_2, window_bounds = array<i64: 1, 256>}, {transform_indices = @transform_3, window_bounds = array<i64: 512, 256>}]} {
    %c0_i32 = arith.constant 0 : i32
    %0 = arith.cmpi eq, %arg2, %c0_i32 : i32
    %1 = arith.extui %0 : i1 to i32
    %c0_i32_0 = arith.constant 0 : i32
    %2 = arith.cmpi ne, %1, %c0_i32_0 : i32
    scf.if %2 {
      %cst_10 = arith.constant 0.000000e+00 : f32
      %12 = vector.broadcast %cst_10 : f32 to vector<512x256xf32>
      %c0_11 = arith.constant 0 : index
      %c0_12 = arith.constant 0 : index
      %13 = vector.load %arg7[%c0_11, %c0_12] : memref<512x256xf32, #tpu.memory_space<vmem>>, vector<512x256xf32>
      tpu.vector_store %arg7[%c0_11, %c0_12], %12 {strides = array<i32>} : memref<512x256xf32, #tpu.memory_space<vmem>>, vector<512x256xf32>,
    } else {
    }
    %c0 = arith.constant 0 : index
    %c0_1 = arith.constant 0 : index
    %3 = vector.load %arg7[%c0, %c0_1] : memref<512x256xf32, #tpu.memory_space<vmem>>, vector<512x256xf32>
    %c0_2 = arith.constant 0 : index
    %c0_3 = arith.constant 0 : index
    %4 = vector.load %arg3[%c0_2, %c0_3] : memref<512x1024xbf16, #tpu.memory_space<vmem>>, vector<512x1024xbf16>
    %c0_4 = arith.constant 0 : index
    %c0_5 = arith.constant 0 : index
    %5 = vector.load %arg4[%c0_4, %c0_5] : memref<1024x256xbf16, #tpu.memory_space<vmem>>, vector<1024x256xbf16>
    %cst = arith.constant dense<0.000000e+00> : vector<512x256xf32>
    %6 = tpu.matmul %4, %5, %cst {dimension_numbers = #tpu.dot_dimension_numbers<[1], [0], [0], [1], [0, 0, 1, 1], [], []>} : vector<512x1024xbf16>, vector<1024x256xbf16>, vector<512x256xf32> -> vector<512x256xf32>
    %7 = arith.addf %3, %6 : vector<512x256xf32>
    %c0_6 = arith.constant 0 : index
    %c0_7 = arith.constant 0 : index
    %8 = vector.load %arg7[%c0_6, %c0_7] : memref<512x256xf32, #tpu.memory_space<vmem>>, vector<512x256xf32>
    tpu.vector_store %arg7[%c0_6, %c0_7], %7 {strides = array<i32>} : memref<512x256xf32, #tpu.memory_space<vmem>>, vector<512x256xf32>,
    %c0_i32_8 = arith.constant 0 : i32
    %9 = arith.cmpi eq, %arg2, %c0_i32_8 : i32
    %10 = arith.extui %9 : i1 to i32
    %c0_i32_9 = arith.constant 0 : i32
    %11 = arith.cmpi ne, %10, %c0_i32_9 : i32
    scf.if %11 {
      %c0_10 = arith.constant 0 : index
      %c0_11 = arith.constant 0 : index
      %12 = vector.load %arg7[%c0_10, %c0_11] : memref<512x256xf32, #tpu.memory_space<vmem>>, vector<512x256xf32>
      %c0_12 = arith.constant 0 : index
      %c0_13 = arith.constant 0 : index
      %13 = vector.load %arg5[%c0_12, %c0_13] : memref<1x256xf32, #tpu.memory_space<vmem>>, vector<1x256xf32>
      %14 = vector.broadcast %13 : vector<1x256xf32> to vector<512x256xf32>
      %15 = arith.addf %12, %14 : vector<512x256xf32>
      %cst_14 = arith.constant 0.000000e+00 : f32
      %16 = vector.broadcast %cst_14 : f32 to vector<512x256xf32>
      %17 = arith.maximumf %15, %16 : vector<512x256xf32>
      %18 = arith.truncf %17 : vector<512x256xf32> to vector<512x256xbf16>
      %c0_15 = arith.constant 0 : index
      %c0_16 = arith.constant 0 : index
      %19 = vector.load %arg6[%c0_15, %c0_16] : memref<512x256xbf16, #tpu.memory_space<vmem>>, vector<512x256xbf16>
      tpu.vector_store %arg6[%c0_15, %c0_16], %18 {strides = array<i32>} : memref<512x256xbf16, #tpu.memory_space<vmem>>, vector<512x256xbf16>,
    } else {
    }
    return
  }
  func.func @transform_0(%arg0: i32, %arg1: i32, %arg2: i32) -> (i32, i32) {
    %c0_i32 = arith.constant 0 : i32
    return %arg0, %arg2 : i32, i32
  }
  func.func @transform_1(%arg0: i32, %arg1: i32, %arg2: i32) -> (i32, i32) {
    %c0_i32 = arith.constant 0 : i32
    return %arg2, %arg1 : i32, i32
  }
  func.func @transform_2(%arg0: i32, %arg1: i32, %arg2: i32) -> (i32, i32) {
    %c0_i32 = arith.constant 0 : i32
    %c0_i32_0 = arith.constant 0 : i32
    return %c0_i32, %arg1 : i32, i32
  }
  func.func @transform_3(%arg0: i32, %arg1: i32, %arg2: i32) -> (i32, i32) {
    %c0_i32 = arith.constant 0 : i32
    return %arg0, %arg1 : i32, i32
  }
}

module attributes {stable_mosaic.version = 11 : i64} {
  func.func @_matmul_kernel(%arg0: i32, %arg1: i32, %arg2: i32, %arg3: memref<512x512xbf16, #tpu.memory_space<vmem>>, %arg4: memref<512x128xbf16, #tpu.memory_space<vmem>>, %arg5: memref<1x128xf32, #tpu.memory_space<vmem>>, %arg6: memref<512x128xbf16, #tpu.memory_space<vmem>>, %arg7: memref<512x128xf32, #tpu.memory_space<vmem>>) attributes {dimension_semantics = [#tpu.dimension_semantics<parallel>, #tpu.dimension_semantics<parallel>, #tpu.dimension_semantics<arbitrary>], iteration_bounds = array<i64: 2, 1, 4>, scalar_prefetch = 0 : i64, scratch_operands = 1 : i64, tpu.core_type = #tpu.core_type<tc>, window_params = [{transform_indices = @transform_0, window_bounds = array<i64: 512, 512>}, {transform_indices = @transform_1, window_bounds = array<i64: 512, 128>}, {transform_indices = @transform_2, window_bounds = array<i64: 1, 128>}, {transform_indices = @transform_3, window_bounds = array<i64: 512, 128>}]} {
    %c0_i32 = arith.constant 0 : i32
    %0 = arith.cmpi eq, %arg2, %c0_i32 : i32
    %1 = arith.extui %0 : i1 to i32
    %c0_i32_0 = arith.constant 0 : i32
    %2 = arith.cmpi ne, %1, %c0_i32_0 : i32
    scf.if %2 {
      %cst_9 = arith.constant 0.000000e+00 : f32
      %12 = vector.broadcast %cst_9 : f32 to vector<512x128xf32>
      %c0_10 = arith.constant 0 : index
      %c0_11 = arith.constant 0 : index
      %13 = vector.load %arg7[%c0_10, %c0_11] : memref<512x128xf32, #tpu.memory_space<vmem>>, vector<512x128xf32>
      tpu.vector_store %arg7[%c0_10, %c0_11], %12 {strides = array<i32>} : memref<512x128xf32, #tpu.memory_space<vmem>>, vector<512x128xf32>,
    } else {
    }
    %c0 = arith.constant 0 : index
    %c0_1 = arith.constant 0 : index
    %3 = vector.load %arg7[%c0, %c0_1] : memref<512x128xf32, #tpu.memory_space<vmem>>, vector<512x128xf32>
    %c0_2 = arith.constant 0 : index
    %c0_3 = arith.constant 0 : index
    %4 = vector.load %arg3[%c0_2, %c0_3] : memref<512x512xbf16, #tpu.memory_space<vmem>>, vector<512x512xbf16>
    %c0_4 = arith.constant 0 : index
    %c0_5 = arith.constant 0 : index
    %5 = vector.load %arg4[%c0_4, %c0_5] : memref<512x128xbf16, #tpu.memory_space<vmem>>, vector<512x128xbf16>
    %cst = arith.constant dense<0.000000e+00> : vector<512x128xf32>
    %6 = tpu.matmul %4, %5, %cst {dimension_numbers = #tpu.dot_dimension_numbers<[1], [0], [0], [1], [0, 0, 1, 1], [], []>} : vector<512x512xbf16>, vector<512x128xbf16>, vector<512x128xf32> -> vector<512x128xf32>
    %7 = arith.addf %3, %6 : vector<512x128xf32>
    %c0_6 = arith.constant 0 : index
    %c0_7 = arith.constant 0 : index
    %8 = vector.load %arg7[%c0_6, %c0_7] : memref<512x128xf32, #tpu.memory_space<vmem>>, vector<512x128xf32>
    tpu.vector_store %arg7[%c0_6, %c0_7], %7 {strides = array<i32>} : memref<512x128xf32, #tpu.memory_space<vmem>>, vector<512x128xf32>,
    %c3_i32 = arith.constant 3 : i32
    %9 = arith.cmpi eq, %arg2, %c3_i32 : i32
    %10 = arith.extui %9 : i1 to i32
    %c0_i32_8 = arith.constant 0 : i32
    %11 = arith.cmpi ne, %10, %c0_i32_8 : i32
    scf.if %11 {
      %c0_9 = arith.constant 0 : index
      %c0_10 = arith.constant 0 : index
      %12 = vector.load %arg7[%c0_9, %c0_10] : memref<512x128xf32, #tpu.memory_space<vmem>>, vector<512x128xf32>
      %c0_11 = arith.constant 0 : index
      %c0_12 = arith.constant 0 : index
      %13 = vector.load %arg5[%c0_11, %c0_12] : memref<1x128xf32, #tpu.memory_space<vmem>>, vector<1x128xf32>
      %14 = vector.broadcast %13 : vector<1x128xf32> to vector<512x128xf32>
      %15 = arith.addf %12, %14 : vector<512x128xf32>
      %cst_13 = arith.constant 0.000000e+00 : f32
      %16 = vector.broadcast %cst_13 : f32 to vector<512x128xf32>
      %17 = arith.maximumf %15, %16 : vector<512x128xf32>
      %18 = arith.truncf %17 : vector<512x128xf32> to vector<512x128xbf16>
      %c0_14 = arith.constant 0 : index
      %c0_15 = arith.constant 0 : index
      %19 = vector.load %arg6[%c0_14, %c0_15] : memref<512x128xbf16, #tpu.memory_space<vmem>>, vector<512x128xbf16>
      tpu.vector_store %arg6[%c0_14, %c0_15], %18 {strides = array<i32>} : memref<512x128xbf16, #tpu.memory_space<vmem>>, vector<512x128xbf16>,
    } else {
    }
    return
  }
  func.func @transform_0(%arg0: i32, %arg1: i32, %arg2: i32) -> (i32, i32) {
    %c0_i32 = arith.constant 0 : i32
    return %arg0, %arg2 : i32, i32
  }
  func.func @transform_1(%arg0: i32, %arg1: i32, %arg2: i32) -> (i32, i32) {
    %c0_i32 = arith.constant 0 : i32
    return %arg2, %arg1 : i32, i32
  }
  func.func @transform_2(%arg0: i32, %arg1: i32, %arg2: i32) -> (i32, i32) {
    %c0_i32 = arith.constant 0 : i32
    %c0_i32_0 = arith.constant 0 : i32
    return %c0_i32, %arg1 : i32, i32
  }
  func.func @transform_3(%arg0: i32, %arg1: i32, %arg2: i32) -> (i32, i32) {
    %c0_i32 = arith.constant 0 : i32
    return %arg0, %arg1 : i32, i32
  }
}

module attributes {stable_mosaic.version = 11 : i64} {
  func.func @_matmul_kernel(%arg0: i32, %arg1: i32, %arg2: i32, %arg3: memref<256x384xbf16, #tpu.memory_space<vmem>>, %arg4: memref<384x128xbf16, #tpu.memory_space<vmem>>, %arg5: memref<1x128xf32, #tpu.memory_space<vmem>>, %arg6: memref<256x128xbf16, #tpu.memory_space<vmem>>, %arg7: memref<256x128xf32, #tpu.memory_space<vmem>>) attributes {dimension_semantics = [#tpu.dimension_semantics<parallel>, #tpu.dimension_semantics<parallel>, #tpu.dimension_semantics<arbitrary>], iteration_bounds = array<i64: 1, 1, 3>, scalar_prefetch = 0 : i64, scratch_operands = 1 : i64, tpu.core_type = #tpu.core_type<tc>, window_params = [{transform_indices = @transform_0, window_bounds = array<i64: 256, 384>}, {transform_indices = @transform_1, window_bounds = array<i64: 384, 128>}, {transform_indices = @transform_2, window_bounds = array<i64: 1, 128>}, {transform_indices = @transform_3, window_bounds = array<i64: 256, 128>}]} {
    %c0_i32 = arith.constant 0 : i32
    %0 = arith.cmpi eq, %arg2, %c0_i32 : i32
    %1 = arith.extui %0 : i1 to i32
    %c0_i32_0 = arith.constant 0 : i32
    %2 = arith.cmpi ne, %1, %c0_i32_0 : i32
    scf.if %2 {
      %cst_9 = arith.constant 0.000000e+00 : f32
      %12 = vector.broadcast %cst_9 : f32 to vector<256x128xf32>
      %c0_10 = arith.constant 0 : index
      %c0_11 = arith.constant 0 : index
      %13 = vector.load %arg7[%c0_10, %c0_11] : memref<256x128xf32, #tpu.memory_space<vmem>>, vector<256x128xf32>
      tpu.vector_store %arg7[%c0_10, %c0_11], %12 {strides = array<i32>} : memref<256x128xf32, #tpu.memory_space<vmem>>, vector<256x128xf32>,
    } else {
    }
    %c0 = arith.constant 0 : index
    %c0_1 = arith.constant 0 : index
    %3 = vector.load %arg7[%c0, %c0_1] : memref<256x128xf32, #tpu.memory_space<vmem>>, vector<256x128xf32>
    %c0_2 = arith.constant 0 : index
    %c0_3 = arith.constant 0 : index
    %4 = vector.load %arg3[%c0_2, %c0_3] : memref<256x384xbf16, #tpu.memory_space<vmem>>, vector<256x384xbf16>
    %c0_4 = arith.constant 0 : index
    %c0_5 = arith.constant 0 : index
    %5 = vector.load %arg4[%c0_4, %c0_5] : memref<384x128xbf16, #tpu.memory_space<vmem>>, vector<384x128xbf16>
    %cst = arith.constant dense<0.000000e+00> : vector<256x128xf32>
    %6 = tpu.matmul %4, %5, %cst {dimension_numbers = #tpu.dot_dimension_numbers<[1], [0], [0], [1], [0, 0, 1, 1], [], []>} : vector<256x384xbf16>, vector<384x128xbf16>, vector<256x128xf32> -> vector<256x128xf32>
    %7 = arith.addf %3, %6 : vector<256x128xf32>
    %c0_6 = arith.constant 0 : index
    %c0_7 = arith.constant 0 : index
    %8 = vector.load %arg7[%c0_6, %c0_7] : memref<256x128xf32, #tpu.memory_space<vmem>>, vector<256x128xf32>
    tpu.vector_store %arg7[%c0_6, %c0_7], %7 {strides = array<i32>} : memref<256x128xf32, #tpu.memory_space<vmem>>, vector<256x128xf32>,
    %c2_i32 = arith.constant 2 : i32
    %9 = arith.cmpi eq, %arg2, %c2_i32 : i32
    %10 = arith.extui %9 : i1 to i32
    %c0_i32_8 = arith.constant 0 : i32
    %11 = arith.cmpi ne, %10, %c0_i32_8 : i32
    scf.if %11 {
      %c0_9 = arith.constant 0 : index
      %c0_10 = arith.constant 0 : index
      %12 = vector.load %arg7[%c0_9, %c0_10] : memref<256x128xf32, #tpu.memory_space<vmem>>, vector<256x128xf32>
      %c0_11 = arith.constant 0 : index
      %c0_12 = arith.constant 0 : index
      %13 = vector.load %arg5[%c0_11, %c0_12] : memref<1x128xf32, #tpu.memory_space<vmem>>, vector<1x128xf32>
      %14 = vector.broadcast %13 : vector<1x128xf32> to vector<256x128xf32>
      %15 = arith.addf %12, %14 : vector<256x128xf32>
      %cst_13 = arith.constant 0.000000e+00 : f32
      %16 = vector.broadcast %cst_13 : f32 to vector<256x128xf32>
      %17 = arith.maximumf %15, %16 : vector<256x128xf32>
      %18 = arith.truncf %17 : vector<256x128xf32> to vector<256x128xbf16>
      %c0_14 = arith.constant 0 : index
      %c0_15 = arith.constant 0 : index
      %19 = vector.load %arg6[%c0_14, %c0_15] : memref<256x128xbf16, #tpu.memory_space<vmem>>, vector<256x128xbf16>
      tpu.vector_store %arg6[%c0_14, %c0_15], %18 {strides = array<i32>} : memref<256x128xbf16, #tpu.memory_space<vmem>>, vector<256x128xbf16>,
    } else {
    }
    return
  }
  func.func @transform_0(%arg0: i32, %arg1: i32, %arg2: i32) -> (i32, i32) {
    %c0_i32 = arith.constant 0 : i32
    return %arg0, %arg2 : i32, i32
  }
  func.func @transform_1(%arg0: i32, %arg1: i32, %arg2: i32) -> (i32, i32) {
    %c0_i32 = arith.constant 0 : i32
    return %arg2, %arg1 : i32, i32
  }
  func.func @transform_2(%arg0: i32, %arg1: i32, %arg2: i32) -> (i32, i32) {
    %c0_i32 = arith.constant 0 : i32
    %c0_i32_0 = arith.constant 0 : i32
    return %c0_i32, %arg1 : i32, i32
  }
  func.func @transform_3(%arg0: i32, %arg1: i32, %arg2: i32) -> (i32, i32) {
    %c0_i32 = arith.constant 0 : i32
    return %arg0, %arg1 : i32, i32
  }
}

module attributes {stable_mosaic.version = 11 : i64} {
  func.func @_matmul_kernel(%arg0: i32, %arg1: i32, %arg2: i32, %arg3: memref<256x128xbf16, #tpu.memory_space<vmem>>, %arg4: memref<128x512xbf16, #tpu.memory_space<vmem>>, %arg5: memref<1x512xf32, #tpu.memory_space<vmem>>, %arg6: memref<256x512xbf16, #tpu.memory_space<vmem>>, %arg7: memref<256x512xf32, #tpu.memory_space<vmem>>) attributes {dimension_semantics = [#tpu.dimension_semantics<parallel>, #tpu.dimension_semantics<parallel>, #tpu.dimension_semantics<arbitrary>], iteration_bounds = array<i64: 1, 1, 1>, scalar_prefetch = 0 : i64, scratch_operands = 1 : i64, tpu.core_type = #tpu.core_type<tc>, window_params = [{transform_indices = @transform_0, window_bounds = array<i64: 256, 128>}, {transform_indices = @transform_1, window_bounds = array<i64: 128, 512>}, {transform_indices = @transform_2, window_bounds = array<i64: 1, 512>}, {transform_indices = @transform_3, window_bounds = array<i64: 256, 512>}]} {
    %c0_i32 = arith.constant 0 : i32
    %0 = arith.cmpi eq, %arg2, %c0_i32 : i32
    %1 = arith.extui %0 : i1 to i32
    %c0_i32_0 = arith.constant 0 : i32
    %2 = arith.cmpi ne, %1, %c0_i32_0 : i32
    scf.if %2 {
      %cst_10 = arith.constant 0.000000e+00 : f32
      %12 = vector.broadcast %cst_10 : f32 to vector<256x512xf32>
      %c0_11 = arith.constant 0 : index
      %c0_12 = arith.constant 0 : index
      %13 = vector.load %arg7[%c0_11, %c0_12] : memref<256x512xf32, #tpu.memory_space<vmem>>, vector<256x512xf32>
      tpu.vector_store %arg7[%c0_11, %c0_12], %12 {strides = array<i32>} : memref<256x512xf32, #tpu.memory_space<vmem>>, vector<256x512xf32>,
    } else {
    }
    %c0 = arith.constant 0 : index
    %c0_1 = arith.constant 0 : index
    %3 = vector.load %arg7[%c0, %c0_1] : memref<256x512xf32, #tpu.memory_space<vmem>>, vector<256x512xf32>
    %c0_2 = arith.constant 0 : index
    %c0_3 = arith.constant 0 : index
    %4 = vector.load %arg3[%c0_2, %c0_3] : memref<256x128xbf16, #tpu.memory_space<vmem>>, vector<256x128xbf16>
    %c0_4 = arith.constant 0 : index
    %c0_5 = arith.constant 0 : index
    %5 = vector.load %arg4[%c0_4, %c0_5] : memref<128x512xbf16, #tpu.memory_space<vmem>>, vector<128x512xbf16>
    %cst = arith.constant dense<0.000000e+00> : vector<256x512xf32>
    %6 = tpu.matmul %4, %5, %cst {dimension_numbers = #tpu.dot_dimension_numbers<[1], [0], [0], [1], [0, 0, 1, 1], [], []>} : vector<256x128xbf16>, vector<128x512xbf16>, vector<256x512xf32> -> vector<256x512xf32>
    %7 = arith.addf %3, %6 : vector<256x512xf32>
    %c0_6 = arith.constant 0 : index
    %c0_7 = arith.constant 0 : index
    %8 = vector.load %arg7[%c0_6, %c0_7] : memref<256x512xf32, #tpu.memory_space<vmem>>, vector<256x512xf32>
    tpu.vector_store %arg7[%c0_6, %c0_7], %7 {strides = array<i32>} : memref<256x512xf32, #tpu.memory_space<vmem>>, vector<256x512xf32>,
    %c0_i32_8 = arith.constant 0 : i32
    %9 = arith.cmpi eq, %arg2, %c0_i32_8 : i32
    %10 = arith.extui %9 : i1 to i32
    %c0_i32_9 = arith.constant 0 : i32
    %11 = arith.cmpi ne, %10, %c0_i32_9 : i32
    scf.if %11 {
      %c0_10 = arith.constant 0 : index
      %c0_11 = arith.constant 0 : index
      %12 = vector.load %arg7[%c0_10, %c0_11] : memref<256x512xf32, #tpu.memory_space<vmem>>, vector<256x512xf32>
      %c0_12 = arith.constant 0 : index
      %c0_13 = arith.constant 0 : index
      %13 = vector.load %arg5[%c0_12, %c0_13] : memref<1x512xf32, #tpu.memory_space<vmem>>, vector<1x512xf32>
      %14 = vector.broadcast %13 : vector<1x512xf32> to vector<256x512xf32>
      %15 = arith.addf %12, %14 : vector<256x512xf32>
      %16 = arith.truncf %15 : vector<256x512xf32> to vector<256x512xbf16>
      %c0_14 = arith.constant 0 : index
      %c0_15 = arith.constant 0 : index
      %17 = vector.load %arg6[%c0_14, %c0_15] : memref<256x512xbf16, #tpu.memory_space<vmem>>, vector<256x512xbf16>
      tpu.vector_store %arg6[%c0_14, %c0_15], %16 {strides = array<i32>} : memref<256x512xbf16, #tpu.memory_space<vmem>>, vector<256x512xbf16>,
    } else {
    }
    return
  }
  func.func @transform_0(%arg0: i32, %arg1: i32, %arg2: i32) -> (i32, i32) {
    %c0_i32 = arith.constant 0 : i32
    return %arg0, %arg2 : i32, i32
  }
  func.func @transform_1(%arg0: i32, %arg1: i32, %arg2: i32) -> (i32, i32) {
    %c0_i32 = arith.constant 0 : i32
    return %arg2, %arg1 : i32, i32
  }
  func.func @transform_2(%arg0: i32, %arg1: i32, %arg2: i32) -> (i32, i32) {
    %c0_i32 = arith.constant 0 : i32
    %c0_i32_0 = arith.constant 0 : i32
    return %c0_i32, %arg1 : i32, i32
  }
  func.func @transform_3(%arg0: i32, %arg1: i32, %arg2: i32) -> (i32, i32) {
    %c0_i32 = arith.constant 0 : i32
    return %arg0, %arg1 : i32, i32
  }
}

module attributes {stable_mosaic.version = 11 : i64} {
  func.func @_matmul_kernel(%arg0: i32, %arg1: i32, %arg2: i32, %arg3: memref<256x512xbf16, #tpu.memory_space<vmem>>, %arg4: memref<512x512xbf16, #tpu.memory_space<vmem>>, %arg5: memref<1x512xf32, #tpu.memory_space<vmem>>, %arg6: memref<256x512xbf16, #tpu.memory_space<vmem>>, %arg7: memref<256x512xf32, #tpu.memory_space<vmem>>) attributes {dimension_semantics = [#tpu.dimension_semantics<parallel>, #tpu.dimension_semantics<parallel>, #tpu.dimension_semantics<arbitrary>], iteration_bounds = array<i64: 1, 1, 4>, scalar_prefetch = 0 : i64, scratch_operands = 1 : i64, tpu.core_type = #tpu.core_type<tc>, window_params = [{transform_indices = @transform_0, window_bounds = array<i64: 256, 512>}, {transform_indices = @transform_1, window_bounds = array<i64: 512, 512>}, {transform_indices = @transform_2, window_bounds = array<i64: 1, 512>}, {transform_indices = @transform_3, window_bounds = array<i64: 256, 512>}]} {
    %c0_i32 = arith.constant 0 : i32
    %0 = arith.cmpi eq, %arg2, %c0_i32 : i32
    %1 = arith.extui %0 : i1 to i32
    %c0_i32_0 = arith.constant 0 : i32
    %2 = arith.cmpi ne, %1, %c0_i32_0 : i32
    scf.if %2 {
      %cst_9 = arith.constant 0.000000e+00 : f32
      %12 = vector.broadcast %cst_9 : f32 to vector<256x512xf32>
      %c0_10 = arith.constant 0 : index
      %c0_11 = arith.constant 0 : index
      %13 = vector.load %arg7[%c0_10, %c0_11] : memref<256x512xf32, #tpu.memory_space<vmem>>, vector<256x512xf32>
      tpu.vector_store %arg7[%c0_10, %c0_11], %12 {strides = array<i32>} : memref<256x512xf32, #tpu.memory_space<vmem>>, vector<256x512xf32>,
    } else {
    }
    %c0 = arith.constant 0 : index
    %c0_1 = arith.constant 0 : index
    %3 = vector.load %arg7[%c0, %c0_1] : memref<256x512xf32, #tpu.memory_space<vmem>>, vector<256x512xf32>
    %c0_2 = arith.constant 0 : index
    %c0_3 = arith.constant 0 : index
    %4 = vector.load %arg3[%c0_2, %c0_3] : memref<256x512xbf16, #tpu.memory_space<vmem>>, vector<256x512xbf16>
    %c0_4 = arith.constant 0 : index
    %c0_5 = arith.constant 0 : index
    %5 = vector.load %arg4[%c0_4, %c0_5] : memref<512x512xbf16, #tpu.memory_space<vmem>>, vector<512x512xbf16>
    %cst = arith.constant dense<0.000000e+00> : vector<256x512xf32>
    %6 = tpu.matmul %4, %5, %cst {dimension_numbers = #tpu.dot_dimension_numbers<[1], [0], [0], [1], [0, 0, 1, 1], [], []>} : vector<256x512xbf16>, vector<512x512xbf16>, vector<256x512xf32> -> vector<256x512xf32>
    %7 = arith.addf %3, %6 : vector<256x512xf32>
    %c0_6 = arith.constant 0 : index
    %c0_7 = arith.constant 0 : index
    %8 = vector.load %arg7[%c0_6, %c0_7] : memref<256x512xf32, #tpu.memory_space<vmem>>, vector<256x512xf32>
    tpu.vector_store %arg7[%c0_6, %c0_7], %7 {strides = array<i32>} : memref<256x512xf32, #tpu.memory_space<vmem>>, vector<256x512xf32>,
    %c3_i32 = arith.constant 3 : i32
    %9 = arith.cmpi eq, %arg2, %c3_i32 : i32
    %10 = arith.extui %9 : i1 to i32
    %c0_i32_8 = arith.constant 0 : i32
    %11 = arith.cmpi ne, %10, %c0_i32_8 : i32
    scf.if %11 {
      %c0_9 = arith.constant 0 : index
      %c0_10 = arith.constant 0 : index
      %12 = vector.load %arg7[%c0_9, %c0_10] : memref<256x512xf32, #tpu.memory_space<vmem>>, vector<256x512xf32>
      %c0_11 = arith.constant 0 : index
      %c0_12 = arith.constant 0 : index
      %13 = vector.load %arg5[%c0_11, %c0_12] : memref<1x512xf32, #tpu.memory_space<vmem>>, vector<1x512xf32>
      %14 = vector.broadcast %13 : vector<1x512xf32> to vector<256x512xf32>
      %15 = arith.addf %12, %14 : vector<256x512xf32>
      %16 = arith.truncf %15 : vector<256x512xf32> to vector<256x512xbf16>
      %c0_13 = arith.constant 0 : index
      %c0_14 = arith.constant 0 : index
      %17 = vector.load %arg6[%c0_13, %c0_14] : memref<256x512xbf16, #tpu.memory_space<vmem>>, vector<256x512xbf16>
      tpu.vector_store %arg6[%c0_13, %c0_14], %16 {strides = array<i32>} : memref<256x512xbf16, #tpu.memory_space<vmem>>, vector<256x512xbf16>,
    } else {
    }
    return
  }
  func.func @transform_0(%arg0: i32, %arg1: i32, %arg2: i32) -> (i32, i32) {
    %c0_i32 = arith.constant 0 : i32
    return %arg0, %arg2 : i32, i32
  }
  func.func @transform_1(%arg0: i32, %arg1: i32, %arg2: i32) -> (i32, i32) {
    %c0_i32 = arith.constant 0 : i32
    return %arg2, %arg1 : i32, i32
  }
  func.func @transform_2(%arg0: i32, %arg1: i32, %arg2: i32) -> (i32, i32) {
    %c0_i32 = arith.constant 0 : i32
    %c0_i32_0 = arith.constant 0 : i32
    return %c0_i32, %arg1 : i32, i32
  }
  func.func @transform_3(%arg0: i32, %arg1: i32, %arg2: i32) -> (i32, i32) {
    %c0_i32 = arith.constant 0 : i32
    return %arg0, %arg1 : i32, i32
  }
}

module attributes {stable_mosaic.version = 11 : i64} {
  func.func @_add_relu_kernel(%arg0: i32, %arg1: memref<256x512xbf16, #tpu.memory_space<vmem>>, %arg2: memref<256x512xbf16, #tpu.memory_space<vmem>>, %arg3: memref<256x512xbf16, #tpu.memory_space<vmem>>) attributes {dimension_semantics = [#tpu.dimension_semantics<arbitrary>], iteration_bounds = array<i64: 1>, scalar_prefetch = 0 : i64, scratch_operands = 0 : i64, tpu.core_type = #tpu.core_type<tc>, window_params = [{transform_indices = @transform_0, window_bounds = array<i64: 256, 512>}, {transform_indices = @transform_1, window_bounds = array<i64: 256, 512>}, {transform_indices = @transform_2, window_bounds = array<i64: 256, 512>}]} {
    %c0 = arith.constant 0 : index
    %c0_0 = arith.constant 0 : index
    %0 = vector.load %arg1[%c0, %c0_0] : memref<256x512xbf16, #tpu.memory_space<vmem>>, vector<256x512xbf16>
    %1 = arith.extf %0 : vector<256x512xbf16> to vector<256x512xf32>
    %c0_1 = arith.constant 0 : index
    %c0_2 = arith.constant 0 : index
    %2 = vector.load %arg2[%c0_1, %c0_2] : memref<256x512xbf16, #tpu.memory_space<vmem>>, vector<256x512xbf16>
    %3 = arith.extf %2 : vector<256x512xbf16> to vector<256x512xf32>
    %4 = arith.addf %1, %3 : vector<256x512xf32>
    %cst = arith.constant 0.000000e+00 : f32
    %5 = vector.broadcast %cst : f32 to vector<256x512xf32>
    %6 = arith.maximumf %4, %5 : vector<256x512xf32>
    %7 = arith.truncf %6 : vector<256x512xf32> to vector<256x512xbf16>
    %c0_3 = arith.constant 0 : index
    %c0_4 = arith.constant 0 : index
    %8 = vector.load %arg3[%c0_3, %c0_4] : memref<256x512xbf16, #tpu.memory_space<vmem>>, vector<256x512xbf16>
    tpu.vector_store %arg3[%c0_3, %c0_4], %7 {strides = array<i32>} : memref<256x512xbf16, #tpu.memory_space<vmem>>, vector<256x512xbf16>,
    return
  }
  func.func @transform_0(%arg0: i32) -> (i32, i32) {
    %c0_i32 = arith.constant 0 : i32
    %c0_i32_0 = arith.constant 0 : i32
    return %arg0, %c0_i32 : i32, i32
  }
  func.func @transform_1(%arg0: i32) -> (i32, i32) {
    %c0_i32 = arith.constant 0 : i32
    %c0_i32_0 = arith.constant 0 : i32
    return %arg0, %c0_i32 : i32, i32
  }
  func.func @transform_2(%arg0: i32) -> (i32, i32) {
    %c0_i32 = arith.constant 0 : i32
    %c0_i32_0 = arith.constant 0 : i32
    return %arg0, %c0_i32 : i32, i32
  }
}

module attributes {stable_mosaic.version = 11 : i64} {
  func.func @_matmul_kernel(%arg0: i32, %arg1: i32, %arg2: i32, %arg3: memref<256x512xbf16, #tpu.memory_space<vmem>>, %arg4: memref<512x128xbf16, #tpu.memory_space<vmem>>, %arg5: memref<1x128xf32, #tpu.memory_space<vmem>>, %arg6: memref<256x128xbf16, #tpu.memory_space<vmem>>, %arg7: memref<256x128xf32, #tpu.memory_space<vmem>>) attributes {dimension_semantics = [#tpu.dimension_semantics<parallel>, #tpu.dimension_semantics<parallel>, #tpu.dimension_semantics<arbitrary>], iteration_bounds = array<i64: 1, 1, 1>, scalar_prefetch = 0 : i64, scratch_operands = 1 : i64, tpu.core_type = #tpu.core_type<tc>, window_params = [{transform_indices = @transform_0, window_bounds = array<i64: 256, 512>}, {transform_indices = @transform_1, window_bounds = array<i64: 512, 128>}, {transform_indices = @transform_2, window_bounds = array<i64: 1, 128>}, {transform_indices = @transform_3, window_bounds = array<i64: 256, 128>}]} {
    %c0_i32 = arith.constant 0 : i32
    %0 = arith.cmpi eq, %arg2, %c0_i32 : i32
    %1 = arith.extui %0 : i1 to i32
    %c0_i32_0 = arith.constant 0 : i32
    %2 = arith.cmpi ne, %1, %c0_i32_0 : i32
    scf.if %2 {
      %cst_10 = arith.constant 0.000000e+00 : f32
      %12 = vector.broadcast %cst_10 : f32 to vector<256x128xf32>
      %c0_11 = arith.constant 0 : index
      %c0_12 = arith.constant 0 : index
      %13 = vector.load %arg7[%c0_11, %c0_12] : memref<256x128xf32, #tpu.memory_space<vmem>>, vector<256x128xf32>
      tpu.vector_store %arg7[%c0_11, %c0_12], %12 {strides = array<i32>} : memref<256x128xf32, #tpu.memory_space<vmem>>, vector<256x128xf32>,
    } else {
    }
    %c0 = arith.constant 0 : index
    %c0_1 = arith.constant 0 : index
    %3 = vector.load %arg7[%c0, %c0_1] : memref<256x128xf32, #tpu.memory_space<vmem>>, vector<256x128xf32>
    %c0_2 = arith.constant 0 : index
    %c0_3 = arith.constant 0 : index
    %4 = vector.load %arg3[%c0_2, %c0_3] : memref<256x512xbf16, #tpu.memory_space<vmem>>, vector<256x512xbf16>
    %c0_4 = arith.constant 0 : index
    %c0_5 = arith.constant 0 : index
    %5 = vector.load %arg4[%c0_4, %c0_5] : memref<512x128xbf16, #tpu.memory_space<vmem>>, vector<512x128xbf16>
    %cst = arith.constant dense<0.000000e+00> : vector<256x128xf32>
    %6 = tpu.matmul %4, %5, %cst {dimension_numbers = #tpu.dot_dimension_numbers<[1], [0], [0], [1], [0, 0, 1, 1], [], []>} : vector<256x512xbf16>, vector<512x128xbf16>, vector<256x128xf32> -> vector<256x128xf32>
    %7 = arith.addf %3, %6 : vector<256x128xf32>
    %c0_6 = arith.constant 0 : index
    %c0_7 = arith.constant 0 : index
    %8 = vector.load %arg7[%c0_6, %c0_7] : memref<256x128xf32, #tpu.memory_space<vmem>>, vector<256x128xf32>
    tpu.vector_store %arg7[%c0_6, %c0_7], %7 {strides = array<i32>} : memref<256x128xf32, #tpu.memory_space<vmem>>, vector<256x128xf32>,
    %c0_i32_8 = arith.constant 0 : i32
    %9 = arith.cmpi eq, %arg2, %c0_i32_8 : i32
    %10 = arith.extui %9 : i1 to i32
    %c0_i32_9 = arith.constant 0 : i32
    %11 = arith.cmpi ne, %10, %c0_i32_9 : i32
    scf.if %11 {
      %c0_10 = arith.constant 0 : index
      %c0_11 = arith.constant 0 : index
      %12 = vector.load %arg7[%c0_10, %c0_11] : memref<256x128xf32, #tpu.memory_space<vmem>>, vector<256x128xf32>
      %c0_12 = arith.constant 0 : index
      %c0_13 = arith.constant 0 : index
      %13 = vector.load %arg5[%c0_12, %c0_13] : memref<1x128xf32, #tpu.memory_space<vmem>>, vector<1x128xf32>
      %14 = vector.broadcast %13 : vector<1x128xf32> to vector<256x128xf32>
      %15 = arith.addf %12, %14 : vector<256x128xf32>
      %cst_14 = arith.constant 0.000000e+00 : f32
      %16 = vector.broadcast %cst_14 : f32 to vector<256x128xf32>
      %17 = arith.maximumf %15, %16 : vector<256x128xf32>
      %18 = arith.truncf %17 : vector<256x128xf32> to vector<256x128xbf16>
      %c0_15 = arith.constant 0 : index
      %c0_16 = arith.constant 0 : index
      %19 = vector.load %arg6[%c0_15, %c0_16] : memref<256x128xbf16, #tpu.memory_space<vmem>>, vector<256x128xbf16>
      tpu.vector_store %arg6[%c0_15, %c0_16], %18 {strides = array<i32>} : memref<256x128xbf16, #tpu.memory_space<vmem>>, vector<256x128xbf16>,
    } else {
    }
    return
  }
  func.func @transform_0(%arg0: i32, %arg1: i32, %arg2: i32) -> (i32, i32) {
    %c0_i32 = arith.constant 0 : i32
    return %arg0, %arg2 : i32, i32
  }
  func.func @transform_1(%arg0: i32, %arg1: i32, %arg2: i32) -> (i32, i32) {
    %c0_i32 = arith.constant 0 : i32
    return %arg2, %arg1 : i32, i32
  }
  func.func @transform_2(%arg0: i32, %arg1: i32, %arg2: i32) -> (i32, i32) {
    %c0_i32 = arith.constant 0 : i32
    %c0_i32_0 = arith.constant 0 : i32
    return %c0_i32, %arg1 : i32, i32
  }
  func.func @transform_3(%arg0: i32, %arg1: i32, %arg2: i32) -> (i32, i32) {
    %c0_i32 = arith.constant 0 : i32
    return %arg0, %arg1 : i32, i32
  }
}

module attributes {stable_mosaic.version = 11 : i64} {
  func.func @_matmul_kernel(%arg0: i32, %arg1: i32, %arg2: i32, %arg3: memref<128x640xbf16, #tpu.memory_space<vmem>>, %arg4: memref<640x128xbf16, #tpu.memory_space<vmem>>, %arg5: memref<1x128xf32, #tpu.memory_space<vmem>>, %arg6: memref<128x128xbf16, #tpu.memory_space<vmem>>, %arg7: memref<128x128xf32, #tpu.memory_space<vmem>>) attributes {dimension_semantics = [#tpu.dimension_semantics<parallel>, #tpu.dimension_semantics<parallel>, #tpu.dimension_semantics<arbitrary>], iteration_bounds = array<i64: 1, 1, 1>, scalar_prefetch = 0 : i64, scratch_operands = 1 : i64, tpu.core_type = #tpu.core_type<tc>, window_params = [{transform_indices = @transform_0, window_bounds = array<i64: 128, 640>}, {transform_indices = @transform_1, window_bounds = array<i64: 640, 128>}, {transform_indices = @transform_2, window_bounds = array<i64: 1, 128>}, {transform_indices = @transform_3, window_bounds = array<i64: 128, 128>}]} {
    %c0_i32 = arith.constant 0 : i32
    %0 = arith.cmpi eq, %arg2, %c0_i32 : i32
    %1 = arith.extui %0 : i1 to i32
    %c0_i32_0 = arith.constant 0 : i32
    %2 = arith.cmpi ne, %1, %c0_i32_0 : i32
    scf.if %2 {
      %cst_10 = arith.constant 0.000000e+00 : f32
      %12 = vector.broadcast %cst_10 : f32 to vector<128x128xf32>
      %c0_11 = arith.constant 0 : index
      %c0_12 = arith.constant 0 : index
      %13 = vector.load %arg7[%c0_11, %c0_12] : memref<128x128xf32, #tpu.memory_space<vmem>>, vector<128x128xf32>
      tpu.vector_store %arg7[%c0_11, %c0_12], %12 {strides = array<i32>} : memref<128x128xf32, #tpu.memory_space<vmem>>, vector<128x128xf32>,
    } else {
    }
    %c0 = arith.constant 0 : index
    %c0_1 = arith.constant 0 : index
    %3 = vector.load %arg7[%c0, %c0_1] : memref<128x128xf32, #tpu.memory_space<vmem>>, vector<128x128xf32>
    %c0_2 = arith.constant 0 : index
    %c0_3 = arith.constant 0 : index
    %4 = vector.load %arg3[%c0_2, %c0_3] : memref<128x640xbf16, #tpu.memory_space<vmem>>, vector<128x640xbf16>
    %c0_4 = arith.constant 0 : index
    %c0_5 = arith.constant 0 : index
    %5 = vector.load %arg4[%c0_4, %c0_5] : memref<640x128xbf16, #tpu.memory_space<vmem>>, vector<640x128xbf16>
    %cst = arith.constant dense<0.000000e+00> : vector<128x128xf32>
    %6 = tpu.matmul %4, %5, %cst {dimension_numbers = #tpu.dot_dimension_numbers<[1], [0], [0], [1], [0, 0, 1, 1], [], []>} : vector<128x640xbf16>, vector<640x128xbf16>, vector<128x128xf32> -> vector<128x128xf32>
    %7 = arith.addf %3, %6 : vector<128x128xf32>
    %c0_6 = arith.constant 0 : index
    %c0_7 = arith.constant 0 : index
    %8 = vector.load %arg7[%c0_6, %c0_7] : memref<128x128xf32, #tpu.memory_space<vmem>>, vector<128x128xf32>
    tpu.vector_store %arg7[%c0_6, %c0_7], %7 {strides = array<i32>} : memref<128x128xf32, #tpu.memory_space<vmem>>, vector<128x128xf32>,
    %c0_i32_8 = arith.constant 0 : i32
    %9 = arith.cmpi eq, %arg2, %c0_i32_8 : i32
    %10 = arith.extui %9 : i1 to i32
    %c0_i32_9 = arith.constant 0 : i32
    %11 = arith.cmpi ne, %10, %c0_i32_9 : i32
    scf.if %11 {
      %c0_10 = arith.constant 0 : index
      %c0_11 = arith.constant 0 : index
      %12 = vector.load %arg7[%c0_10, %c0_11] : memref<128x128xf32, #tpu.memory_space<vmem>>, vector<128x128xf32>
      %c0_12 = arith.constant 0 : index
      %c0_13 = arith.constant 0 : index
      %13 = vector.load %arg5[%c0_12, %c0_13] : memref<1x128xf32, #tpu.memory_space<vmem>>, vector<1x128xf32>
      %14 = vector.broadcast %13 : vector<1x128xf32> to vector<128x128xf32>
      %15 = arith.addf %12, %14 : vector<128x128xf32>
      %cst_14 = arith.constant 0.000000e+00 : f32
      %16 = vector.broadcast %cst_14 : f32 to vector<128x128xf32>
      %17 = arith.maximumf %15, %16 : vector<128x128xf32>
      %18 = arith.truncf %17 : vector<128x128xf32> to vector<128x128xbf16>
      %c0_15 = arith.constant 0 : index
      %c0_16 = arith.constant 0 : index
      %19 = vector.load %arg6[%c0_15, %c0_16] : memref<128x128xbf16, #tpu.memory_space<vmem>>, vector<128x128xbf16>
      tpu.vector_store %arg6[%c0_15, %c0_16], %18 {strides = array<i32>} : memref<128x128xbf16, #tpu.memory_space<vmem>>, vector<128x128xbf16>,
    } else {
    }
    return
  }
  func.func @transform_0(%arg0: i32, %arg1: i32, %arg2: i32) -> (i32, i32) {
    %c0_i32 = arith.constant 0 : i32
    return %arg0, %arg2 : i32, i32
  }
  func.func @transform_1(%arg0: i32, %arg1: i32, %arg2: i32) -> (i32, i32) {
    %c0_i32 = arith.constant 0 : i32
    return %arg2, %arg1 : i32, i32
  }
  func.func @transform_2(%arg0: i32, %arg1: i32, %arg2: i32) -> (i32, i32) {
    %c0_i32 = arith.constant 0 : i32
    %c0_i32_0 = arith.constant 0 : i32
    return %c0_i32, %arg1 : i32, i32
  }
  func.func @transform_3(%arg0: i32, %arg1: i32, %arg2: i32) -> (i32, i32) {
    %c0_i32 = arith.constant 0 : i32
    return %arg0, %arg1 : i32, i32
  }
}

module attributes {stable_mosaic.version = 11 : i64} {
  func.func @_matmul_kernel(%arg0: i32, %arg1: i32, %arg2: i32, %arg3: memref<128x128xbf16, #tpu.memory_space<vmem>>, %arg4: memref<128x256xbf16, #tpu.memory_space<vmem>>, %arg5: memref<1x256xf32, #tpu.memory_space<vmem>>, %arg6: memref<128x256xbf16, #tpu.memory_space<vmem>>, %arg7: memref<128x256xf32, #tpu.memory_space<vmem>>) attributes {dimension_semantics = [#tpu.dimension_semantics<parallel>, #tpu.dimension_semantics<parallel>, #tpu.dimension_semantics<arbitrary>], iteration_bounds = array<i64: 1, 1, 1>, scalar_prefetch = 0 : i64, scratch_operands = 1 : i64, tpu.core_type = #tpu.core_type<tc>, window_params = [{transform_indices = @transform_0, window_bounds = array<i64: 128, 128>}, {transform_indices = @transform_1, window_bounds = array<i64: 128, 256>}, {transform_indices = @transform_2, window_bounds = array<i64: 1, 256>}, {transform_indices = @transform_3, window_bounds = array<i64: 128, 256>}]} {
    %c0_i32 = arith.constant 0 : i32
    %0 = arith.cmpi eq, %arg2, %c0_i32 : i32
    %1 = arith.extui %0 : i1 to i32
    %c0_i32_0 = arith.constant 0 : i32
    %2 = arith.cmpi ne, %1, %c0_i32_0 : i32
    scf.if %2 {
      %cst_10 = arith.constant 0.000000e+00 : f32
      %12 = vector.broadcast %cst_10 : f32 to vector<128x256xf32>
      %c0_11 = arith.constant 0 : index
      %c0_12 = arith.constant 0 : index
      %13 = vector.load %arg7[%c0_11, %c0_12] : memref<128x256xf32, #tpu.memory_space<vmem>>, vector<128x256xf32>
      tpu.vector_store %arg7[%c0_11, %c0_12], %12 {strides = array<i32>} : memref<128x256xf32, #tpu.memory_space<vmem>>, vector<128x256xf32>,
    } else {
    }
    %c0 = arith.constant 0 : index
    %c0_1 = arith.constant 0 : index
    %3 = vector.load %arg7[%c0, %c0_1] : memref<128x256xf32, #tpu.memory_space<vmem>>, vector<128x256xf32>
    %c0_2 = arith.constant 0 : index
    %c0_3 = arith.constant 0 : index
    %4 = vector.load %arg3[%c0_2, %c0_3] : memref<128x128xbf16, #tpu.memory_space<vmem>>, vector<128x128xbf16>
    %c0_4 = arith.constant 0 : index
    %c0_5 = arith.constant 0 : index
    %5 = vector.load %arg4[%c0_4, %c0_5] : memref<128x256xbf16, #tpu.memory_space<vmem>>, vector<128x256xbf16>
    %cst = arith.constant dense<0.000000e+00> : vector<128x256xf32>
    %6 = tpu.matmul %4, %5, %cst {dimension_numbers = #tpu.dot_dimension_numbers<[1], [0], [0], [1], [0, 0, 1, 1], [], []>} : vector<128x128xbf16>, vector<128x256xbf16>, vector<128x256xf32> -> vector<128x256xf32>
    %7 = arith.addf %3, %6 : vector<128x256xf32>
    %c0_6 = arith.constant 0 : index
    %c0_7 = arith.constant 0 : index
    %8 = vector.load %arg7[%c0_6, %c0_7] : memref<128x256xf32, #tpu.memory_space<vmem>>, vector<128x256xf32>
    tpu.vector_store %arg7[%c0_6, %c0_7], %7 {strides = array<i32>} : memref<128x256xf32, #tpu.memory_space<vmem>>, vector<128x256xf32>,
    %c0_i32_8 = arith.constant 0 : i32
    %9 = arith.cmpi eq, %arg2, %c0_i32_8 : i32
    %10 = arith.extui %9 : i1 to i32
    %c0_i32_9 = arith.constant 0 : i32
    %11 = arith.cmpi ne, %10, %c0_i32_9 : i32
    scf.if %11 {
      %c0_10 = arith.constant 0 : index
      %c0_11 = arith.constant 0 : index
      %12 = vector.load %arg7[%c0_10, %c0_11] : memref<128x256xf32, #tpu.memory_space<vmem>>, vector<128x256xf32>
      %c0_12 = arith.constant 0 : index
      %c0_13 = arith.constant 0 : index
      %13 = vector.load %arg5[%c0_12, %c0_13] : memref<1x256xf32, #tpu.memory_space<vmem>>, vector<1x256xf32>
      %14 = vector.broadcast %13 : vector<1x256xf32> to vector<128x256xf32>
      %15 = arith.addf %12, %14 : vector<128x256xf32>
      %16 = arith.truncf %15 : vector<128x256xf32> to vector<128x256xbf16>
      %c0_14 = arith.constant 0 : index
      %c0_15 = arith.constant 0 : index
      %17 = vector.load %arg6[%c0_14, %c0_15] : memref<128x256xbf16, #tpu.memory_space<vmem>>, vector<128x256xbf16>
      tpu.vector_store %arg6[%c0_14, %c0_15], %16 {strides = array<i32>} : memref<128x256xbf16, #tpu.memory_space<vmem>>, vector<128x256xbf16>,
    } else {
    }
    return
  }
  func.func @transform_0(%arg0: i32, %arg1: i32, %arg2: i32) -> (i32, i32) {
    %c0_i32 = arith.constant 0 : i32
    return %arg0, %arg2 : i32, i32
  }
  func.func @transform_1(%arg0: i32, %arg1: i32, %arg2: i32) -> (i32, i32) {
    %c0_i32 = arith.constant 0 : i32
    return %arg2, %arg1 : i32, i32
  }
  func.func @transform_2(%arg0: i32, %arg1: i32, %arg2: i32) -> (i32, i32) {
    %c0_i32 = arith.constant 0 : i32
    %c0_i32_0 = arith.constant 0 : i32
    return %c0_i32, %arg1 : i32, i32
  }
  func.func @transform_3(%arg0: i32, %arg1: i32, %arg2: i32) -> (i32, i32) {
    %c0_i32 = arith.constant 0 : i32
    return %arg0, %arg1 : i32, i32
  }
}

module attributes {stable_mosaic.version = 11 : i64} {
  func.func @_matmul_kernel(%arg0: i32, %arg1: i32, %arg2: i32, %arg3: memref<128x512xbf16, #tpu.memory_space<vmem>>, %arg4: memref<512x256xbf16, #tpu.memory_space<vmem>>, %arg5: memref<1x256xf32, #tpu.memory_space<vmem>>, %arg6: memref<128x256xbf16, #tpu.memory_space<vmem>>, %arg7: memref<128x256xf32, #tpu.memory_space<vmem>>) attributes {dimension_semantics = [#tpu.dimension_semantics<parallel>, #tpu.dimension_semantics<parallel>, #tpu.dimension_semantics<arbitrary>], iteration_bounds = array<i64: 1, 1, 1>, scalar_prefetch = 0 : i64, scratch_operands = 1 : i64, tpu.core_type = #tpu.core_type<tc>, window_params = [{transform_indices = @transform_0, window_bounds = array<i64: 128, 512>}, {transform_indices = @transform_1, window_bounds = array<i64: 512, 256>}, {transform_indices = @transform_2, window_bounds = array<i64: 1, 256>}, {transform_indices = @transform_3, window_bounds = array<i64: 128, 256>}]} {
    %c0_i32 = arith.constant 0 : i32
    %0 = arith.cmpi eq, %arg2, %c0_i32 : i32
    %1 = arith.extui %0 : i1 to i32
    %c0_i32_0 = arith.constant 0 : i32
    %2 = arith.cmpi ne, %1, %c0_i32_0 : i32
    scf.if %2 {
      %cst_10 = arith.constant 0.000000e+00 : f32
      %12 = vector.broadcast %cst_10 : f32 to vector<128x256xf32>
      %c0_11 = arith.constant 0 : index
      %c0_12 = arith.constant 0 : index
      %13 = vector.load %arg7[%c0_11, %c0_12] : memref<128x256xf32, #tpu.memory_space<vmem>>, vector<128x256xf32>
      tpu.vector_store %arg7[%c0_11, %c0_12], %12 {strides = array<i32>} : memref<128x256xf32, #tpu.memory_space<vmem>>, vector<128x256xf32>,
    } else {
    }
    %c0 = arith.constant 0 : index
    %c0_1 = arith.constant 0 : index
    %3 = vector.load %arg7[%c0, %c0_1] : memref<128x256xf32, #tpu.memory_space<vmem>>, vector<128x256xf32>
    %c0_2 = arith.constant 0 : index
    %c0_3 = arith.constant 0 : index
    %4 = vector.load %arg3[%c0_2, %c0_3] : memref<128x512xbf16, #tpu.memory_space<vmem>>, vector<128x512xbf16>
    %c0_4 = arith.constant 0 : index
    %c0_5 = arith.constant 0 : index
    %5 = vector.load %arg4[%c0_4, %c0_5] : memref<512x256xbf16, #tpu.memory_space<vmem>>, vector<512x256xbf16>
    %cst = arith.constant dense<0.000000e+00> : vector<128x256xf32>
    %6 = tpu.matmul %4, %5, %cst {dimension_numbers = #tpu.dot_dimension_numbers<[1], [0], [0], [1], [0, 0, 1, 1], [], []>} : vector<128x512xbf16>, vector<512x256xbf16>, vector<128x256xf32> -> vector<128x256xf32>
    %7 = arith.addf %3, %6 : vector<128x256xf32>
    %c0_6 = arith.constant 0 : index
    %c0_7 = arith.constant 0 : index
    %8 = vector.load %arg7[%c0_6, %c0_7] : memref<128x256xf32, #tpu.memory_space<vmem>>, vector<128x256xf32>
    tpu.vector_store %arg7[%c0_6, %c0_7], %7 {strides = array<i32>} : memref<128x256xf32, #tpu.memory_space<vmem>>, vector<128x256xf32>,
    %c0_i32_8 = arith.constant 0 : i32
    %9 = arith.cmpi eq, %arg2, %c0_i32_8 : i32
    %10 = arith.extui %9 : i1 to i32
    %c0_i32_9 = arith.constant 0 : i32
    %11 = arith.cmpi ne, %10, %c0_i32_9 : i32
    scf.if %11 {
      %c0_10 = arith.constant 0 : index
      %c0_11 = arith.constant 0 : index
      %12 = vector.load %arg7[%c0_10, %c0_11] : memref<128x256xf32, #tpu.memory_space<vmem>>, vector<128x256xf32>
      %c0_12 = arith.constant 0 : index
      %c0_13 = arith.constant 0 : index
      %13 = vector.load %arg5[%c0_12, %c0_13] : memref<1x256xf32, #tpu.memory_space<vmem>>, vector<1x256xf32>
      %14 = vector.broadcast %13 : vector<1x256xf32> to vector<128x256xf32>
      %15 = arith.addf %12, %14 : vector<128x256xf32>
      %16 = arith.truncf %15 : vector<128x256xf32> to vector<128x256xbf16>
      %c0_14 = arith.constant 0 : index
      %c0_15 = arith.constant 0 : index
      %17 = vector.load %arg6[%c0_14, %c0_15] : memref<128x256xbf16, #tpu.memory_space<vmem>>, vector<128x256xbf16>
      tpu.vector_store %arg6[%c0_14, %c0_15], %16 {strides = array<i32>} : memref<128x256xbf16, #tpu.memory_space<vmem>>, vector<128x256xbf16>,
    } else {
    }
    return
  }
  func.func @transform_0(%arg0: i32, %arg1: i32, %arg2: i32) -> (i32, i32) {
    %c0_i32 = arith.constant 0 : i32
    return %arg0, %arg2 : i32, i32
  }
  func.func @transform_1(%arg0: i32, %arg1: i32, %arg2: i32) -> (i32, i32) {
    %c0_i32 = arith.constant 0 : i32
    return %arg2, %arg1 : i32, i32
  }
  func.func @transform_2(%arg0: i32, %arg1: i32, %arg2: i32) -> (i32, i32) {
    %c0_i32 = arith.constant 0 : i32
    %c0_i32_0 = arith.constant 0 : i32
    return %c0_i32, %arg1 : i32, i32
  }
  func.func @transform_3(%arg0: i32, %arg1: i32, %arg2: i32) -> (i32, i32) {
    %c0_i32 = arith.constant 0 : i32
    return %arg0, %arg1 : i32, i32
  }
}

module attributes {stable_mosaic.version = 11 : i64} {
  func.func @_add_relu_kernel(%arg0: i32, %arg1: memref<128x256xbf16, #tpu.memory_space<vmem>>, %arg2: memref<128x256xbf16, #tpu.memory_space<vmem>>, %arg3: memref<128x256xbf16, #tpu.memory_space<vmem>>) attributes {dimension_semantics = [#tpu.dimension_semantics<arbitrary>], iteration_bounds = array<i64: 1>, scalar_prefetch = 0 : i64, scratch_operands = 0 : i64, tpu.core_type = #tpu.core_type<tc>, window_params = [{transform_indices = @transform_0, window_bounds = array<i64: 128, 256>}, {transform_indices = @transform_1, window_bounds = array<i64: 128, 256>}, {transform_indices = @transform_2, window_bounds = array<i64: 128, 256>}]} {
    %c0 = arith.constant 0 : index
    %c0_0 = arith.constant 0 : index
    %0 = vector.load %arg1[%c0, %c0_0] : memref<128x256xbf16, #tpu.memory_space<vmem>>, vector<128x256xbf16>
    %1 = arith.extf %0 : vector<128x256xbf16> to vector<128x256xf32>
    %c0_1 = arith.constant 0 : index
    %c0_2 = arith.constant 0 : index
    %2 = vector.load %arg2[%c0_1, %c0_2] : memref<128x256xbf16, #tpu.memory_space<vmem>>, vector<128x256xbf16>
    %3 = arith.extf %2 : vector<128x256xbf16> to vector<128x256xf32>
    %4 = arith.addf %1, %3 : vector<128x256xf32>
    %cst = arith.constant 0.000000e+00 : f32
    %5 = vector.broadcast %cst : f32 to vector<128x256xf32>
    %6 = arith.maximumf %4, %5 : vector<128x256xf32>
    %7 = arith.truncf %6 : vector<128x256xf32> to vector<128x256xbf16>
    %c0_3 = arith.constant 0 : index
    %c0_4 = arith.constant 0 : index
    %8 = vector.load %arg3[%c0_3, %c0_4] : memref<128x256xbf16, #tpu.memory_space<vmem>>, vector<128x256xbf16>
    tpu.vector_store %arg3[%c0_3, %c0_4], %7 {strides = array<i32>} : memref<128x256xbf16, #tpu.memory_space<vmem>>, vector<128x256xbf16>,
    return
  }
  func.func @transform_0(%arg0: i32) -> (i32, i32) {
    %c0_i32 = arith.constant 0 : i32
    %c0_i32_0 = arith.constant 0 : i32
    return %arg0, %c0_i32 : i32, i32
  }
  func.func @transform_1(%arg0: i32) -> (i32, i32) {
    %c0_i32 = arith.constant 0 : i32
    %c0_i32_0 = arith.constant 0 : i32
    return %arg0, %c0_i32 : i32, i32
  }
  func.func @transform_2(%arg0: i32) -> (i32, i32) {
    %c0_i32 = arith.constant 0 : i32
    %c0_i32_0 = arith.constant 0 : i32
    return %arg0, %c0_i32 : i32, i32
  }
}

module attributes {stable_mosaic.version = 11 : i64} {
  func.func @_matmul_kernel(%arg0: i32, %arg1: i32, %arg2: i32, %arg3: memref<128x256xbf16, #tpu.memory_space<vmem>>, %arg4: memref<256x128xbf16, #tpu.memory_space<vmem>>, %arg5: memref<1x128xf32, #tpu.memory_space<vmem>>, %arg6: memref<128x128xbf16, #tpu.memory_space<vmem>>, %arg7: memref<128x128xf32, #tpu.memory_space<vmem>>) attributes {dimension_semantics = [#tpu.dimension_semantics<parallel>, #tpu.dimension_semantics<parallel>, #tpu.dimension_semantics<arbitrary>], iteration_bounds = array<i64: 1, 1, 1>, scalar_prefetch = 0 : i64, scratch_operands = 1 : i64, tpu.core_type = #tpu.core_type<tc>, window_params = [{transform_indices = @transform_0, window_bounds = array<i64: 128, 256>}, {transform_indices = @transform_1, window_bounds = array<i64: 256, 128>}, {transform_indices = @transform_2, window_bounds = array<i64: 1, 128>}, {transform_indices = @transform_3, window_bounds = array<i64: 128, 128>}]} {
    %c0_i32 = arith.constant 0 : i32
    %0 = arith.cmpi eq, %arg2, %c0_i32 : i32
    %1 = arith.extui %0 : i1 to i32
    %c0_i32_0 = arith.constant 0 : i32
    %2 = arith.cmpi ne, %1, %c0_i32_0 : i32
    scf.if %2 {
      %cst_10 = arith.constant 0.000000e+00 : f32
      %12 = vector.broadcast %cst_10 : f32 to vector<128x128xf32>
      %c0_11 = arith.constant 0 : index
      %c0_12 = arith.constant 0 : index
      %13 = vector.load %arg7[%c0_11, %c0_12] : memref<128x128xf32, #tpu.memory_space<vmem>>, vector<128x128xf32>
      tpu.vector_store %arg7[%c0_11, %c0_12], %12 {strides = array<i32>} : memref<128x128xf32, #tpu.memory_space<vmem>>, vector<128x128xf32>,
    } else {
    }
    %c0 = arith.constant 0 : index
    %c0_1 = arith.constant 0 : index
    %3 = vector.load %arg7[%c0, %c0_1] : memref<128x128xf32, #tpu.memory_space<vmem>>, vector<128x128xf32>
    %c0_2 = arith.constant 0 : index
    %c0_3 = arith.constant 0 : index
    %4 = vector.load %arg3[%c0_2, %c0_3] : memref<128x256xbf16, #tpu.memory_space<vmem>>, vector<128x256xbf16>
    %c0_4 = arith.constant 0 : index
    %c0_5 = arith.constant 0 : index
    %5 = vector.load %arg4[%c0_4, %c0_5] : memref<256x128xbf16, #tpu.memory_space<vmem>>, vector<256x128xbf16>
    %cst = arith.constant dense<0.000000e+00> : vector<128x128xf32>
    %6 = tpu.matmul %4, %5, %cst {dimension_numbers = #tpu.dot_dimension_numbers<[1], [0], [0], [1], [0, 0, 1, 1], [], []>} : vector<128x256xbf16>, vector<256x128xbf16>, vector<128x128xf32> -> vector<128x128xf32>
    %7 = arith.addf %3, %6 : vector<128x128xf32>
    %c0_6 = arith.constant 0 : index
    %c0_7 = arith.constant 0 : index
    %8 = vector.load %arg7[%c0_6, %c0_7] : memref<128x128xf32, #tpu.memory_space<vmem>>, vector<128x128xf32>
    tpu.vector_store %arg7[%c0_6, %c0_7], %7 {strides = array<i32>} : memref<128x128xf32, #tpu.memory_space<vmem>>, vector<128x128xf32>,
    %c0_i32_8 = arith.constant 0 : i32
    %9 = arith.cmpi eq, %arg2, %c0_i32_8 : i32
    %10 = arith.extui %9 : i1 to i32
    %c0_i32_9 = arith.constant 0 : i32
    %11 = arith.cmpi ne, %10, %c0_i32_9 : i32
    scf.if %11 {
      %c0_10 = arith.constant 0 : index
      %c0_11 = arith.constant 0 : index
      %12 = vector.load %arg7[%c0_10, %c0_11] : memref<128x128xf32, #tpu.memory_space<vmem>>, vector<128x128xf32>
      %c0_12 = arith.constant 0 : index
      %c0_13 = arith.constant 0 : index
      %13 = vector.load %arg5[%c0_12, %c0_13] : memref<1x128xf32, #tpu.memory_space<vmem>>, vector<1x128xf32>
      %14 = vector.broadcast %13 : vector<1x128xf32> to vector<128x128xf32>
      %15 = arith.addf %12, %14 : vector<128x128xf32>
      %cst_14 = arith.constant 0.000000e+00 : f32
      %16 = vector.broadcast %cst_14 : f32 to vector<128x128xf32>
      %17 = arith.maximumf %15, %16 : vector<128x128xf32>
      %18 = arith.truncf %17 : vector<128x128xf32> to vector<128x128xbf16>
      %c0_15 = arith.constant 0 : index
      %c0_16 = arith.constant 0 : index
      %19 = vector.load %arg6[%c0_15, %c0_16] : memref<128x128xbf16, #tpu.memory_space<vmem>>, vector<128x128xbf16>
      tpu.vector_store %arg6[%c0_15, %c0_16], %18 {strides = array<i32>} : memref<128x128xbf16, #tpu.memory_space<vmem>>, vector<128x128xbf16>,
    } else {
    }
    return
  }
  func.func @transform_0(%arg0: i32, %arg1: i32, %arg2: i32) -> (i32, i32) {
    %c0_i32 = arith.constant 0 : i32
    return %arg0, %arg2 : i32, i32
  }
  func.func @transform_1(%arg0: i32, %arg1: i32, %arg2: i32) -> (i32, i32) {
    %c0_i32 = arith.constant 0 : i32
    return %arg2, %arg1 : i32, i32
  }
  func.func @transform_2(%arg0: i32, %arg1: i32, %arg2: i32) -> (i32, i32) {
    %c0_i32 = arith.constant 0 : i32
    %c0_i32_0 = arith.constant 0 : i32
    return %c0_i32, %arg1 : i32, i32
  }
  func.func @transform_3(%arg0: i32, %arg1: i32, %arg2: i32) -> (i32, i32) {
    %c0_i32 = arith.constant 0 : i32
    return %arg0, %arg1 : i32, i32
  }
}

module attributes {stable_mosaic.version = 11 : i64} {
  func.func @_mean9_kernel(%arg0: i32, %arg1: memref<9x16x256xbf16, #tpu.memory_space<vmem>>, %arg2: memref<16x256xf32, #tpu.memory_space<vmem>>) attributes {dimension_semantics = [#tpu.dimension_semantics<arbitrary>], iteration_bounds = array<i64: 1>, scalar_prefetch = 0 : i64, scratch_operands = 0 : i64, tpu.core_type = #tpu.core_type<tc>, window_params = [{pipeline_mode = #tpu.pipeline_mode<synchronous>, transform_indices = @transform_0, window_bounds = array<i64: 9, 16, 256>}, {pipeline_mode = #tpu.pipeline_mode<synchronous>, transform_indices = @transform_1, window_bounds = array<i64: 16, 256>}]} {
    %c0 = arith.constant 0 : index
    %c0_0 = arith.constant 0 : index
    %c0_1 = arith.constant 0 : index
    %0 = vector.load %arg1[%c0, %c0_0, %c0_1] : memref<9x16x256xbf16, #tpu.memory_space<vmem>>, vector<9x16x256xbf16>
    %1 = arith.extf %0 : vector<9x16x256xbf16> to vector<9x16x256xf32>
    %cst = arith.constant dense<0.000000e+00> : vector<16x256xf32>
    %2 = vector.multi_reduction <add>, %1, %cst [0] : vector<9x16x256xf32> to vector<16x256xf32>
    %cst_2 = arith.constant 0.111111112 : f32
    %3 = vector.broadcast %cst_2 : f32 to vector<16x256xf32>
    %4 = arith.mulf %2, %3 : vector<16x256xf32>
    %c0_3 = arith.constant 0 : index
    %c0_4 = arith.constant 0 : index
    %5 = vector.load %arg2[%c0_3, %c0_4] : memref<16x256xf32, #tpu.memory_space<vmem>>, vector<16x256xf32>
    tpu.vector_store %arg2[%c0_3, %c0_4], %4 {strides = array<i32>} : memref<16x256xf32, #tpu.memory_space<vmem>>, vector<16x256xf32>,
    return
  }
  func.func @transform_0(%arg0: i32) -> (i32, i32, i32) {
    %c0_i32 = arith.constant 0 : i32
    %c0_i32_0 = arith.constant 0 : i32
    %c0_i32_1 = arith.constant 0 : i32
    %c0_i32_2 = arith.constant 0 : i32
    return %c0_i32, %c0_i32_0, %c0_i32_1 : i32, i32, i32
  }
  func.func @transform_1(%arg0: i32) -> (i32, i32) {
    %c0_i32 = arith.constant 0 : i32
    %c0_i32_0 = arith.constant 0 : i32
    %c0_i32_1 = arith.constant 0 : i32
    return %c0_i32, %c0_i32_0 : i32, i32
  }
}

module attributes {stable_mosaic.version = 11 : i64} {
  func.func @_matmul_kernel(%arg0: i32, %arg1: i32, %arg2: i32, %arg3: memref<128x128xbf16, #tpu.memory_space<vmem>>, %arg4: memref<128x128xbf16, #tpu.memory_space<vmem>>, %arg5: memref<1x128xf32, #tpu.memory_space<vmem>>, %arg6: memref<128x128xf32, #tpu.memory_space<vmem>>, %arg7: memref<128x128xf32, #tpu.memory_space<vmem>>) attributes {dimension_semantics = [#tpu.dimension_semantics<parallel>, #tpu.dimension_semantics<parallel>, #tpu.dimension_semantics<arbitrary>], iteration_bounds = array<i64: 1, 1, 1>, scalar_prefetch = 0 : i64, scratch_operands = 1 : i64, tpu.core_type = #tpu.core_type<tc>, window_params = [{transform_indices = @transform_0, window_bounds = array<i64: 128, 128>}, {transform_indices = @transform_1, window_bounds = array<i64: 128, 128>}, {transform_indices = @transform_2, window_bounds = array<i64: 1, 128>}, {transform_indices = @transform_3, window_bounds = array<i64: 128, 128>}]} {
    %c0_i32 = arith.constant 0 : i32
    %0 = arith.cmpi eq, %arg2, %c0_i32 : i32
    %1 = arith.extui %0 : i1 to i32
    %c0_i32_0 = arith.constant 0 : i32
    %2 = arith.cmpi ne, %1, %c0_i32_0 : i32
    scf.if %2 {
      %cst_10 = arith.constant 0.000000e+00 : f32
      %12 = vector.broadcast %cst_10 : f32 to vector<128x128xf32>
      %c0_11 = arith.constant 0 : index
      %c0_12 = arith.constant 0 : index
      %13 = vector.load %arg7[%c0_11, %c0_12] : memref<128x128xf32, #tpu.memory_space<vmem>>, vector<128x128xf32>
      tpu.vector_store %arg7[%c0_11, %c0_12], %12 {strides = array<i32>} : memref<128x128xf32, #tpu.memory_space<vmem>>, vector<128x128xf32>,
    } else {
    }
    %c0 = arith.constant 0 : index
    %c0_1 = arith.constant 0 : index
    %3 = vector.load %arg7[%c0, %c0_1] : memref<128x128xf32, #tpu.memory_space<vmem>>, vector<128x128xf32>
    %c0_2 = arith.constant 0 : index
    %c0_3 = arith.constant 0 : index
    %4 = vector.load %arg3[%c0_2, %c0_3] : memref<128x128xbf16, #tpu.memory_space<vmem>>, vector<128x128xbf16>
    %c0_4 = arith.constant 0 : index
    %c0_5 = arith.constant 0 : index
    %5 = vector.load %arg4[%c0_4, %c0_5] : memref<128x128xbf16, #tpu.memory_space<vmem>>, vector<128x128xbf16>
    %cst = arith.constant dense<0.000000e+00> : vector<128x128xf32>
    %6 = tpu.matmul %4, %5, %cst {dimension_numbers = #tpu.dot_dimension_numbers<[1], [0], [0], [1], [0, 0, 1, 1], [], []>} : vector<128x128xbf16>, vector<128x128xbf16>, vector<128x128xf32> -> vector<128x128xf32>
    %7 = arith.addf %3, %6 : vector<128x128xf32>
    %c0_6 = arith.constant 0 : index
    %c0_7 = arith.constant 0 : index
    %8 = vector.load %arg7[%c0_6, %c0_7] : memref<128x128xf32, #tpu.memory_space<vmem>>, vector<128x128xf32>
    tpu.vector_store %arg7[%c0_6, %c0_7], %7 {strides = array<i32>} : memref<128x128xf32, #tpu.memory_space<vmem>>, vector<128x128xf32>,
    %c0_i32_8 = arith.constant 0 : i32
    %9 = arith.cmpi eq, %arg2, %c0_i32_8 : i32
    %10 = arith.extui %9 : i1 to i32
    %c0_i32_9 = arith.constant 0 : i32
    %11 = arith.cmpi ne, %10, %c0_i32_9 : i32
    scf.if %11 {
      %c0_10 = arith.constant 0 : index
      %c0_11 = arith.constant 0 : index
      %12 = vector.load %arg7[%c0_10, %c0_11] : memref<128x128xf32, #tpu.memory_space<vmem>>, vector<128x128xf32>
      %c0_12 = arith.constant 0 : index
      %c0_13 = arith.constant 0 : index
      %13 = vector.load %arg5[%c0_12, %c0_13] : memref<1x128xf32, #tpu.memory_space<vmem>>, vector<1x128xf32>
      %14 = vector.broadcast %13 : vector<1x128xf32> to vector<128x128xf32>
      %15 = arith.addf %12, %14 : vector<128x128xf32>
      %cst_14 = arith.constant 0.000000e+00 : f32
      %16 = vector.broadcast %cst_14 : f32 to vector<128x128xf32>
      %17 = arith.subf %16, %15 : vector<128x128xf32>
      %18 = math.exp %17 : vector<128x128xf32>
      %cst_15 = arith.constant 1.000000e+00 : f32
      %19 = vector.broadcast %cst_15 : f32 to vector<128x128xf32>
      %20 = arith.addf %19, %18 : vector<128x128xf32>
      %cst_16 = arith.constant 1.000000e+00 : f32
      %21 = vector.broadcast %cst_16 : f32 to vector<128x128xf32>
      %22 = arith.divf %21, %20 : vector<128x128xf32>
      %c0_17 = arith.constant 0 : index
      %c0_18 = arith.constant 0 : index
      %23 = vector.load %arg6[%c0_17, %c0_18] : memref<128x128xf32, #tpu.memory_space<vmem>>, vector<128x128xf32>
      tpu.vector_store %arg6[%c0_17, %c0_18], %22 {strides = array<i32>} : memref<128x128xf32, #tpu.memory_space<vmem>>, vector<128x128xf32>,
    } else {
    }
    return
  }
  func.func @transform_0(%arg0: i32, %arg1: i32, %arg2: i32) -> (i32, i32) {
    %c0_i32 = arith.constant 0 : i32
    return %arg0, %arg2 : i32, i32
  }
  func.func @transform_1(%arg0: i32, %arg1: i32, %arg2: i32) -> (i32, i32) {
    %c0_i32 = arith.constant 0 : i32
    return %arg2, %arg1 : i32, i32
  }
  func.func @transform_2(%arg0: i32, %arg1: i32, %arg2: i32) -> (i32, i32) {
    %c0_i32 = arith.constant 0 : i32
    %c0_i32_0 = arith.constant 0 : i32
    return %c0_i32, %arg1 : i32, i32
  }
  func.func @transform_3(%arg0: i32, %arg1: i32, %arg2: i32) -> (i32, i32) {
    %c0_i32 = arith.constant 0 : i32
    return %arg0, %arg1 : i32, i32
  }
}

module attributes {stable_mosaic.version = 11 : i64} {
  func.func @_sqerr_sum_kernel(%arg0: i32, %arg1: memref<8x128xf32, #tpu.memory_space<vmem>>, %arg2: memref<8x128xf32, #tpu.memory_space<vmem>>, %arg3: memref<1x1xf32, #tpu.memory_space<smem>>) attributes {dimension_semantics = [#tpu.dimension_semantics<arbitrary>], iteration_bounds = array<i64: 1>, scalar_prefetch = 0 : i64, scratch_operands = 0 : i64, tpu.core_type = #tpu.core_type<tc>, window_params = [{pipeline_mode = #tpu.pipeline_mode<synchronous>, transform_indices = @transform_0, window_bounds = array<i64: 8, 128>}, {pipeline_mode = #tpu.pipeline_mode<synchronous>, transform_indices = @transform_1, window_bounds = array<i64: 8, 128>}, {transform_indices = @transform_2, window_bounds = array<i64: 1, 1>}]} {
    %c0 = arith.constant 0 : index
    %c0_0 = arith.constant 0 : index
    %0 = vector.load %arg2[%c0, %c0_0] : memref<8x128xf32, #tpu.memory_space<vmem>>, vector<8x128xf32>
    %c0_1 = arith.constant 0 : index
    %c0_2 = arith.constant 0 : index
    %1 = vector.load %arg1[%c0_1, %c0_2] : memref<8x128xf32, #tpu.memory_space<vmem>>, vector<8x128xf32>
    %2 = arith.subf %0, %1 : vector<8x128xf32>
    %3 = arith.mulf %2, %2 : vector<8x128xf32>
    %4 = vector.shape_cast %3 : vector<8x128xf32> to vector<1x8x128xf32>
    %cst = arith.constant dense<0.000000e+00> : vector<1xf32>
    %5 = vector.multi_reduction <add>, %4, %cst [1, 2] : vector<1x8x128xf32> to vector<1xf32>
    %6 = vector.shape_cast %5 : vector<1xf32> to vector<1x1x1xf32>
    %7 = vector.extract %6[0, 0, 0] : f32 from vector<1x1x1xf32>
    %c0_3 = arith.constant 0 : index
    %c0_4 = arith.constant 0 : index
    %8 = memref.load %arg3[%c0_3, %c0_4] : memref<1x1xf32, #tpu.memory_space<smem>>
    memref.store %7, %arg3[%c0_3, %c0_4] : memref<1x1xf32, #tpu.memory_space<smem>>
    return
  }
  func.func @transform_0(%arg0: i32) -> (i32, i32) {
    %c0_i32 = arith.constant 0 : i32
    %c0_i32_0 = arith.constant 0 : i32
    %c0_i32_1 = arith.constant 0 : i32
    return %c0_i32, %c0_i32_0 : i32, i32
  }
  func.func @transform_1(%arg0: i32) -> (i32, i32) {
    %c0_i32 = arith.constant 0 : i32
    %c0_i32_0 = arith.constant 0 : i32
    %c0_i32_1 = arith.constant 0 : i32
    return %c0_i32, %c0_i32_0 : i32, i32
  }
  func.func @transform_2(%arg0: i32) -> (i32, i32) {
    %c0_i32 = arith.constant 0 : i32
    %c0_i32_0 = arith.constant 0 : i32
    %c0_i32_1 = arith.constant 0 : i32
    return %c0_i32, %c0_i32_0 : i32, i32
  }
}

</mosaic_0001>

<bundles_post_ra>
// kernel: eq.3
= control target key start
LH: loop header
LB: loop body
LE: loop exit
PB: predicated region body
PF: predicated region fallthrough
CT: control target
= control target key end

     0   :  { %v15_v2 = vmov 0   ;;  %s40_s0 = inlined_call_operand.vmem [shape: s32[4], index: 0, kind: input, shape index: {}]   ;;  %s41_s1 = inlined_call_operand.vmem [shape: s32[4], index: 1, kind: input, shape index: {}]   ;;  %s42_s2 = inlined_call_operand.vmem [shape: pred[4], index: 2, kind: output, shape index: {}]  }
   0x1   :  { %v3_v0 = vld [vmem:[%s40_s0] sm:$0x1] }
   0x2   :  { %v4_v1 = vld [vmem:[%s41_s1] sm:$0x1] }
   0x3   :  { %vm7_vm0 = vcmp.eq.s32.totalorder %v3_v0, %v4_v1 }
   0x4   :  { %v8_v3 = vsel %vm7_vm0, 1, %v15_v2 }
   0x5   :  { %v10_v4 = vpack.c.b16 %v15_v2, %v8_v3 }
   0x7   :  { %v11_v5 = vpack.c.b8 %v15_v2, %v10_v4 }
   0x9   :  { %13 = vst [vmem:[%s42_s2] sm:$0x1] %v11_v5 }

</bundles_post_ra>
